<compile_context>
chip_gen: v6e
topology: v6e:2x2x1
jax: 0.10.0
libtpu: 0.0.40
codegen_flags: <defaults>
</compile_context>

<pallas_src>
import jax
import jax.numpy as jnp
import numpy as np
from jax.experimental import pallas as pl
from jax.experimental.pallas import tpu as pltpu


# --------------------------------------------------------------------------------------
# Relative position index / parameter init (mirrors the PyTorch module)
# --------------------------------------------------------------------------------------
def make_relative_position_index(window_size):
    Wh, Ww = window_size
    coords_h = jnp.arange(Wh)
    coords_w = jnp.arange(Ww)
    coords = jnp.stack(jnp.meshgrid(coords_h, coords_w, indexing="ij"))  # (2, Wh, Ww)
    coords_flatten = coords.reshape(2, -1)                               # (2, N)
    relative_coords = coords_flatten[:, :, None] - coords_flatten[:, None, :]
    relative_coords = jnp.transpose(relative_coords, (1, 2, 0))          # (N, N, 2)
    relative_coords = relative_coords.at[:, :, 0].add(Wh - 1)
    relative_coords = relative_coords.at[:, :, 1].add(Ww - 1)
    relative_coords = relative_coords.at[:, :, 0].multiply(2 * Ww - 1)
    return relative_coords.sum(-1)                                       # (N, N)


def init_params(key, dim, window_size, num_heads, dtype=jnp.float32):
    Wh, Ww = window_size
    k1, k2, k3, k4, k5 = jax.random.split(key, 5)
    num_rel = (2 * Wh - 1) * (2 * Ww - 1)
    rel_bias_table = (
        0.02 * jax.random.truncated_normal(k1, -2.0, 2.0, (num_rel, num_heads))
    ).astype(dtype)
    # nn.Linear weights stored in (in, out) layout (already transposed vs torch).
    w_qkv = (0.02 * jax.random.normal(k2, (dim, 3 * dim))).astype(dtype)
    b_qkv = (0.02 * jax.random.normal(k3, (3 * dim,))).astype(dtype)
    w_proj = (0.02 * jax.random.normal(k4, (dim, dim))).astype(dtype)
    b_proj = (0.02 * jax.random.normal(k5, (dim,))).astype(dtype)
    return dict(rel_bias_table=rel_bias_table, w_qkv=w_qkv, b_qkv=b_qkv,
                w_proj=w_proj, b_proj=b_proj)


# --------------------------------------------------------------------------------------
# Generation-aware block sizing
# --------------------------------------------------------------------------------------
def _tpu_generation_defaults():
    """Returns (vmem_limit_bytes to request, max token rows per step, preferred #steps)."""
    kind = ""
    try:
        kind = jax.devices()[0].device_kind.lower()
    except Exception:
        pass
    if "v7" in kind:
        # v7x: 64 MiB physical VMEM per TC (32 MiB scoped default), 2 TCs per chip ->
        # keep per-step blocks modest and prefer >= 4 grid steps so each core pipelines.
        return 48 * 1024 * 1024, 512, 4
    # v5e / v6e: 128 MiB physical (16 / 32 MiB scoped default) -> raise the limit and
    # allow larger blocks to amortize the ~0.35 us/step overhead.
    return 64 * 1024 * 1024, 1024, 2


def _step_vmem_bytes(WB, N, C, H, nW, x_itemsize):
    """Rough per-grid-step VMEM estimate (lane widths padded to 128)."""
    n_rows = WB * N
    G = H * WB
    hd = C // H
    lp = lambda d: -(-d // 128) * 128
    est = 0
    est += 2 * 2 * n_rows * C * x_itemsize            # x in + out blocks (double-buffered)
    est += 2 * (C * lp(3 * C) + C * lp(C)) * 2        # resident bf16 weights (x2 buffers)
    est += 2 * (lp(3 * C) + lp(C)) * 4                # biases (f32)
    est += 2 * (H + nW) * N * lp(N) * 4               # rel bias + mask (f32)
    est += n_rows * lp(3 * C) * (4 + 2)               # qkv f32 + bf16 copy
    est += 3 * G * N * lp(hd) * 2                     # q, k, v (bf16)
    est += 2 * G * N * lp(N) * 4                      # scores + probs (f32)
    est += G * N * lp(hd) * 4                         # o (f32)
    est += n_rows * lp(C) * (2 + 4)                   # o slab (bf16) + y (f32)
    return est


def _pick_windows_per_block(B_, nW, N, C, H, x_itemsize, rows_cap, vmem_budget, min_steps):
    """Windows folded into one grid step.

    Must divide B_ and be a multiple of nW (so the resident (nW, N, N) mask aligns to
    block boundaries).  Pick the biggest block that fits the VMEM budget / rows cap,
    preferring enough grid steps for software pipelining (and v7x megacore sharding).
    """
    cands = [wb for wb in range(nW, B_ + 1, nW) if B_ % wb == 0]
    fit = [wb for wb in cands
           if wb * N <= rows_cap
           and _step_vmem_bytes(wb, N, C, H, nW, x_itemsize) <= vmem_budget]
    fit = fit or [cands[0]]
    for steps in (min_steps, 2, 1):
        sel = [wb for wb in fit if B_ // wb >= steps]
        if sel:
            return max(sel)
    return max(fit)


# --------------------------------------------------------------------------------------
# Fused window-attention kernel
# --------------------------------------------------------------------------------------
def window_attention_pallas(x, params, window_size, num_heads, mask=None,
                            qk_scale=None, compute_dtype=jnp.bfloat16):
    """x: (B_, N, C); mask: (nW, N, N) or None.  Returns (B_, N, C) in x.dtype."""
    B_, N, C = x.shape
    Wh, Ww = window_size
    assert N == Wh * Ww
    assert C % num_heads == 0
    H = num_heads
    hd = C // H
    scale = qk_scale if qk_scale is not None else hd ** (-0.5)

    # ---- plain-JAX glue: bias gather + weight casting (done once per call) ----------
    rel_idx = make_relative_position_index(window_size).reshape(-1)
    rel_bias = params["rel_bias_table"][rel_idx].reshape(N, N, H)
    rel_bias = jnp.transpose(rel_bias, (2, 0, 1)).astype(jnp.float32)    # (H, N, N)

    # Fold the q-scale into the q columns of the fused QKV weight/bias; MXU operands
    # are bf16, biases stay f32 (added after the f32-accumulating matmul).
    col_scale = jnp.concatenate(
        [jnp.full((C,), scale, jnp.float32), jnp.ones((2 * C,), jnp.float32)])
    w_qkv_c = (params["w_qkv"].astype(jnp.float32) * col_scale).astype(compute_dtype)
    b_qkv_c = (params["b_qkv"].astype(jnp.float32) * col_scale).reshape(1, 3 * C)
    w_proj_c = params["w_proj"].astype(compute_dtype)                    # (C, C)
    b_proj_c = params["b_proj"].astype(jnp.float32).reshape(1, C)

    has_mask = mask is not None
    if has_mask:
        mask_arr = mask.astype(jnp.float32)                              # (nW, N, N)
        nW = mask_arr.shape[0]
        # Window index must be the fastest-varying axis of B_ (PyTorch convention);
        # WB % nW == 0 and B_ % WB == 0 keep block boundaries aligned to whole images.
        assert B_ % nW == 0, "B_ must be batch*num_windows with windows fastest-varying"
    else:
        mask_arr = jnp.zeros((1, N, N), dtype=jnp.float32)
        nW = 1

    vmem_limit, rows_cap, min_steps = _tpu_generation_defaults()
    WB = _pick_windows_per_block(B_, nW, N, C, H, jnp.dtype(x.dtype).itemsize,
                                 rows_cap, int(0.6 * vmem_limit), min_steps)
    G = H * WB                      # flattened (head, window) batch
    n_rows = WB * N                 # tokens per grid step
    # NOTE: the in-kernel (n_rows, hd) <-> (WB, N, hd) reshapes are free only when
    # N % 8 == 0 (true for 4x4/8x8 windows).  For 7x7 windows (N=49) pad the window
    # token count to a multiple of 8 wrapper-side (with -inf mask rows) to avoid
    # Mosaic relayout copies.

    def kernel(x_ref, wqkv_ref, bqkv_ref, wp_ref, bp_ref, bias_ref, mask_ref,
               o_ref, oslab_ref):
        # (WB, N, C) -> (WB*N, C) token slab (leading/sublane merge only).
        xw = x_ref[...].reshape(n_rows, C).astype(compute_dtype)

        # --- QKV projection: one lane-dense (n_rows, C) @ (C, 3C) matmul, f32 acc ----
        qkv = jnp.dot(xw, wqkv_ref[...], preferred_element_type=jnp.float32)
        qkv = (qkv + bqkv_ref[...]).astype(compute_dtype)                # (n_rows, 3C)

        # --- split per head with static lane slices, head axis to the front ----------
        def heads(base):                                                 # -> (G, N, hd)
            parts = [qkv[:, base + h * hd: base + (h + 1) * hd].reshape(1, WB, N, hd)
                     for h in range(H)]
            return jnp.concatenate(parts, axis=0).reshape(G, N, hd)

        q = heads(0)            # scale already folded into the q weight columns
        k = heads(C)
        v = heads(2 * C)

        # --- scores + relative-position bias (+ shift mask), f32 ---------------------
        s = jnp.einsum('gid,gjd->gij', q, k,
                       preferred_element_type=jnp.float32)               # (G, N, N)
        s = s.reshape(H, WB, N, N) + bias_ref[...][:, None]
        if has_mask:
            # Windows inside the block are ordered (..., nW) with nW fastest; broadcast
            # add the (nW, N, N) mask -- no jnp.tile copies.
            s = s.reshape(H, WB // nW, nW, N, N) + mask_ref[...][None, None]
        s = s.reshape(G, N, N)

        # --- softmax in f32; divide via EUP approximate reciprocal (free slot) -------
        s = s - jnp.max(s, axis=-1, keepdims=True)
        e = jnp.exp(s)
        p = e * pl.reciprocal(jnp.sum(e, axis=-1, keepdims=True), approx=True)

        # --- attention output, packed into a lane-dense (n_rows, C) slab -------------
        o = jnp.einsum('gij,gjd->gid', p.astype(compute_dtype), v,
                       preferred_element_type=jnp.float32)               # (G, N, hd)
        o = o.astype(compute_dtype).reshape(H, n_rows, hd)
        for h in range(H):
            oslab_ref[:, h * hd:(h + 1) * hd] = o[h]                     # concat(heads)

        # --- output projection: one C-deep, C-wide matmul ----------------------------
        y = jnp.dot(oslab_ref[...], wp_ref[...],
                    preferred_element_type=jnp.float32) + bp_ref[...]    # (n_rows, C)
        o_ref[...] = y.reshape(WB, N, C).astype(o_ref.dtype)

    # The six weight/bias/bias-table/mask operands have constant index_maps, so they are
    # fetched once and stay resident.  (Where supported, pipeline_mode=pl.Buffered(1) or
    # a one-shot DMA into scratch would also drop their second pipeline buffer -- only
    # worth it at production C >= 768.)
    grid_spec = pltpu.PrefetchScalarGridSpec(
        num_scalar_prefetch=0,
        grid=(B_ // WB,),
        in_specs=[
            pl.BlockSpec((WB, N, C), lambda b: (b, 0, 0)),        # x          (pipelined)
            pl.BlockSpec((C, 3 * C), lambda b: (0, 0)),           # qkv weight (resident)
            pl.BlockSpec((1, 3 * C), lambda b: (0, 0)),           # qkv bias   (resident)
            pl.BlockSpec((C, C), lambda b: (0, 0)),               # proj weight(resident)
            pl.BlockSpec((1, C), lambda b: (0, 0)),               # proj bias  (resident)
            pl.BlockSpec((H, N, N), lambda b: (0, 0, 0)),         # rel bias   (resident)
            pl.BlockSpec((nW, N, N), lambda b: (0, 0, 0)),        # mask       (resident)
        ],
        out_specs=pl.BlockSpec((WB, N, C), lambda b: (b, 0, 0)),
        scratch_shapes=[pltpu.VMEM((n_rows, C), compute_dtype)],  # head-concat slab
    )

    isz = jnp.dtype(x.dtype).itemsize
    wsz = jnp.dtype(compute_dtype).itemsize
    flops = (2 * B_ * N * C * 3 * C            # QKV projection
             + 2 * B_ * H * N * N * hd         # q @ k^T
             + 2 * B_ * H * N * N * hd         # p @ v
             + 2 * B_ * N * C * C)             # output projection
    cost = pl.CostEstimate(
        flops=flops,
        transcendentals=B_ * H * N * N,        # exp in softmax
        bytes_accessed=(2 * B_ * N * C * isz + (3 * C * C + C * C) * wsz
                        + 4 * C * 4 + (H + nW) * N * N * 4))

    return pl.pallas_call(
        kernel,
        out_shape=jax.ShapeDtypeStruct((B_, N, C), x.dtype),
        grid_spec=grid_spec,
        compiler_params=pltpu.CompilerParams(
            dimension_semantics=("parallel",),
            vmem_limit_bytes=vmem_limit),
        cost_estimate=cost,
    )(x, w_qkv_c, b_qkv_c, w_proj_c, b_proj_c, rel_bias, mask_arr)


# --------------------------------------------------------------------------------------
# Pure-JAX reference (mirrors the PyTorch forward, f32)
# --------------------------------------------------------------------------------------
def window_attention_reference(x, params, window_size, num_heads, mask=None,
                               qk_scale=None):
    B_, N, C = x.shape
    head_dim = C // num_heads
    scale = qk_scale if qk_scale is not None else head_dim ** (-0.5)
    qkv = x @ params["w_qkv"] + params["b_qkv"]
    qkv = qkv.reshape(B_, N, 3, num_heads, head_dim).transpose(2, 0, 3, 1, 4)
    q, k, v = qkv[0], qkv[1], qkv[2]
    q = q * scale
    attn = jnp.einsum("bhnd,bhmd->bhnm", q, k)
    rel_idx = make_relative_position_index(window_size).reshape(-1)
    rel_bias = params["rel_bias_table"][rel_idx].reshape(N, N, num_heads)
    rel_bias = jnp.transpose(rel_bias, (2, 0, 1))
    attn = attn + rel_bias[None]
    if mask is not None:
        nW = mask.shape[0]
        attn = attn.reshape(B_ // nW, nW, num_heads, N, N) + mask[None, :, None]
        attn = attn.reshape(-1, num_heads, N, N)
    attn = jax.nn.softmax(attn, axis=-1)
    out = jnp.einsum("bhnm,bhmd->bhnd", attn, v)
    out = out.transpose(0, 2, 1, 3).reshape(B_, N, C)
    return out @ params["w_proj"] + params["b_proj"]


if __name__ == "__main__":
    dim = 32
    window_size = (4, 4)
    num_heads = 4
    N = window_size[0] * window_size[1]      # 16
    nW = 4                                   # windows per image
    B = 2
    B_ = B * nW                              # 8

    key = jax.random.PRNGKey(0)
    kx, km, kp = jax.random.split(key, 3)
    x = jax.random.normal(kx, (B_, N, dim), dtype=jnp.float32)
    # Shifted-window-style mask: 0 / -100 per window pair (mimics SwinT mask values).
    mask_bits = jax.random.bernoulli(km, 0.3, (nW, N, N))
    mask = jnp.where(mask_bits, -100.0, 0.0).astype(jnp.float32)

    params = init_params(kp, dim, window_size, num_heads)

    # Tolerances account for bf16 MXU operands + the EUP approximate reciprocal in the
    # softmax normalizer (use compute_dtype=jnp.float32 / approx=False for tighter parity).
    out = window_attention_pallas(x, params, window_size, num_heads, mask=mask)
    out = jax.block_until_ready(out)
    ref = window_attention_reference(x, params, window_size, num_heads, mask=mask)
    np.testing.assert_allclose(np.asarray(out), np.asarray(ref), rtol=3e-2, atol=3e-3)

    # Also exercise the mask=None path.
    out_nm = window_attention_pallas(x, params, window_size, num_heads, mask=None)
    out_nm = jax.block_until_ready(out_nm)
    ref_nm = window_attention_reference(x, params, window_size, num_heads, mask=None)
    np.testing.assert_allclose(np.asarray(out_nm), np.asarray(ref_nm), rtol=3e-2, atol=3e-3)

    print("KERNEL_OK")
</pallas_src>

<mosaic_0001>
module attributes {stable_mosaic.version = 11 : i64} {
  func.func @kernel(%arg0: i32, %arg1: memref<4x16x32xf32, #tpu.memory_space<vmem>>, %arg2: memref<32x96xbf16, #tpu.memory_space<vmem>>, %arg3: memref<1x96xf32, #tpu.memory_space<vmem>>, %arg4: memref<32x32xbf16, #tpu.memory_space<vmem>>, %arg5: memref<1x32xf32, #tpu.memory_space<vmem>>, %arg6: memref<4x16x16xf32, #tpu.memory_space<vmem>>, %arg7: memref<4x16x16xf32, #tpu.memory_space<vmem>>, %arg8: memref<4x16x32xf32, #tpu.memory_space<vmem>>, %arg9: memref<64x32xbf16, #tpu.memory_space<vmem>>) attributes {dimension_semantics = [#tpu.dimension_semantics<parallel>], iteration_bounds = array<i64: 2>, scalar_prefetch = 0 : i64, scratch_operands = 1 : i64, tpu.core_type = #tpu.core_type<tc>, window_params = [{transform_indices = @transform_0, window_bounds = array<i64: 4, 16, 32>}, {pipeline_mode = #tpu.pipeline_mode<synchronous>, transform_indices = @transform_1, window_bounds = array<i64: 32, 96>}, {pipeline_mode = #tpu.pipeline_mode<synchronous>, transform_indices = @transform_2, window_bounds = array<i64: 1, 96>}, {pipeline_mode = #tpu.pipeline_mode<synchronous>, transform_indices = @transform_3, window_bounds = array<i64: 32, 32>}, {pipeline_mode = #tpu.pipeline_mode<synchronous>, transform_indices = @transform_4, window_bounds = array<i64: 1, 32>}, {pipeline_mode = #tpu.pipeline_mode<synchronous>, transform_indices = @transform_5, window_bounds = array<i64: 4, 16, 16>}, {pipeline_mode = #tpu.pipeline_mode<synchronous>, transform_indices = @transform_6, window_bounds = array<i64: 4, 16, 16>}, {transform_indices = @transform_7, window_bounds = array<i64: 4, 16, 32>}]} {
    %c0 = arith.constant 0 : index
    %c0_0 = arith.constant 0 : index
    %c0_1 = arith.constant 0 : index
    %0 = vector.load %arg1[%c0, %c0_0, %c0_1] : memref<4x16x32xf32, #tpu.memory_space<vmem>>, vector<4x16x32xf32>
    %1 = vector.shape_cast %0 : vector<4x16x32xf32> to vector<64x32xf32>
    %2 = arith.truncf %1 : vector<64x32xf32> to vector<64x32xbf16>
    %c0_2 = arith.constant 0 : index
    %c0_3 = arith.constant 0 : index
    %3 = vector.load %arg2[%c0_2, %c0_3] : memref<32x96xbf16, #tpu.memory_space<vmem>>, vector<32x96xbf16>
    %cst = arith.constant dense<0.000000e+00> : vector<64x96xf32>
    %4 = tpu.matmul %2, %3, %cst {dimension_numbers = #tpu.dot_dimension_numbers<[1], [0], [0], [1], [0, 0, 1, 1], [], []>} : vector<64x32xbf16>, vector<32x96xbf16>, vector<64x96xf32> -> vector<64x96xf32>
    %c0_4 = arith.constant 0 : index
    %c0_5 = arith.constant 0 : index
    %5 = vector.load %arg3[%c0_4, %c0_5] : memref<1x96xf32, #tpu.memory_space<vmem>>, vector<1x96xf32>
    %6 = vector.broadcast %5 : vector<1x96xf32> to vector<64x96xf32>
    %7 = arith.addf %4, %6 : vector<64x96xf32>
    %8 = arith.truncf %7 : vector<64x96xf32> to vector<64x96xbf16>
    %9 = vector.extract_strided_slice %8 {offsets = [0, 0], sizes = [64, 8], strides = [1, 1]} : vector<64x96xbf16> to vector<64x8xbf16>
    %10 = vector.shape_cast %9 : vector<64x8xbf16> to vector<1x4x16x8xbf16>
    %11 = vector.extract_strided_slice %8 {offsets = [0, 8], sizes = [64, 8], strides = [1, 1]} : vector<64x96xbf16> to vector<64x8xbf16>
    %12 = vector.shape_cast %11 : vector<64x8xbf16> to vector<1x4x16x8xbf16>
    %13 = vector.extract_strided_slice %8 {offsets = [0, 16], sizes = [64, 8], strides = [1, 1]} : vector<64x96xbf16> to vector<64x8xbf16>
    %14 = vector.shape_cast %13 : vector<64x8xbf16> to vector<1x4x16x8xbf16>
    %15 = vector.extract_strided_slice %8 {offsets = [0, 24], sizes = [64, 8], strides = [1, 1]} : vector<64x96xbf16> to vector<64x8xbf16>
    %16 = vector.shape_cast %15 : vector<64x8xbf16> to vector<1x4x16x8xbf16>
    %17 = tpu.concatenate %10, %12, %14, %16 in 0 : vector<1x4x16x8xbf16>, vector<1x4x16x8xbf16>, vector<1x4x16x8xbf16>, vector<1x4x16x8xbf16> -> vector<4x4x16x8xbf16>
    %18 = vector.shape_cast %17 : vector<4x4x16x8xbf16> to vector<16x16x8xbf16>
    %19 = vector.extract_strided_slice %8 {offsets = [0, 32], sizes = [64, 8], strides = [1, 1]} : vector<64x96xbf16> to vector<64x8xbf16>
    %20 = vector.shape_cast %19 : vector<64x8xbf16> to vector<1x4x16x8xbf16>
    %21 = vector.extract_strided_slice %8 {offsets = [0, 40], sizes = [64, 8], strides = [1, 1]} : vector<64x96xbf16> to vector<64x8xbf16>
    %22 = vector.shape_cast %21 : vector<64x8xbf16> to vector<1x4x16x8xbf16>
    %23 = vector.extract_strided_slice %8 {offsets = [0, 48], sizes = [64, 8], strides = [1, 1]} : vector<64x96xbf16> to vector<64x8xbf16>
    %24 = vector.shape_cast %23 : vector<64x8xbf16> to vector<1x4x16x8xbf16>
    %25 = vector.extract_strided_slice %8 {offsets = [0, 56], sizes = [64, 8], strides = [1, 1]} : vector<64x96xbf16> to vector<64x8xbf16>
    %26 = vector.shape_cast %25 : vector<64x8xbf16> to vector<1x4x16x8xbf16>
    %27 = tpu.concatenate %20, %22, %24, %26 in 0 : vector<1x4x16x8xbf16>, vector<1x4x16x8xbf16>, vector<1x4x16x8xbf16>, vector<1x4x16x8xbf16> -> vector<4x4x16x8xbf16>
    %28 = vector.shape_cast %27 : vector<4x4x16x8xbf16> to vector<16x16x8xbf16>
    %29 = vector.extract_strided_slice %8 {offsets = [0, 64], sizes = [64, 8], strides = [1, 1]} : vector<64x96xbf16> to vector<64x8xbf16>
    %30 = vector.shape_cast %29 : vector<64x8xbf16> to vector<1x4x16x8xbf16>
    %31 = vector.extract_strided_slice %8 {offsets = [0, 72], sizes = [64, 8], strides = [1, 1]} : vector<64x96xbf16> to vector<64x8xbf16>
    %32 = vector.shape_cast %31 : vector<64x8xbf16> to vector<1x4x16x8xbf16>
    %33 = vector.extract_strided_slice %8 {offsets = [0, 80], sizes = [64, 8], strides = [1, 1]} : vector<64x96xbf16> to vector<64x8xbf16>
    %34 = vector.shape_cast %33 : vector<64x8xbf16> to vector<1x4x16x8xbf16>
    %35 = vector.extract_strided_slice %8 {offsets = [0, 88], sizes = [64, 8], strides = [1, 1]} : vector<64x96xbf16> to vector<64x8xbf16>
    %36 = vector.shape_cast %35 : vector<64x8xbf16> to vector<1x4x16x8xbf16>
    %37 = tpu.concatenate %30, %32, %34, %36 in 0 : vector<1x4x16x8xbf16>, vector<1x4x16x8xbf16>, vector<1x4x16x8xbf16>, vector<1x4x16x8xbf16> -> vector<4x4x16x8xbf16>
    %38 = vector.shape_cast %37 : vector<4x4x16x8xbf16> to vector<16x16x8xbf16>
    "tpu.trace_start"() <{level = 10 : i32, message = "gid,gjd->gij"}> : () -> ()
    %cst_6 = arith.constant dense<0.000000e+00> : vector<16x16x16xf32>
    %39 = tpu.matmul %18, %28, %cst_6 {dimension_numbers = #tpu.dot_dimension_numbers<[2], [2], [1], [1], [0, 0, 0, 1, 1, 1], [0], [0]>} : vector<16x16x8xbf16>, vector<16x16x8xbf16>, vector<16x16x16xf32> -> vector<16x16x16xf32>
    "tpu.trace_stop"() : () -> ()
    %40 = vector.shape_cast %39 : vector<16x16x16xf32> to vector<4x4x16x16xf32>
    %c0_7 = arith.constant 0 : index
    %c0_8 = arith.constant 0 : index
    %c0_9 = arith.constant 0 : index
    %41 = vector.load %arg6[%c0_7, %c0_8, %c0_9] : memref<4x16x16xf32, #tpu.memory_space<vmem>>, vector<4x16x16xf32>
    %42 = vector.shape_cast %41 : vector<4x16x16xf32> to vector<4x1x16x16xf32>
    %43 = vector.broadcast %42 : vector<4x1x16x16xf32> to vector<4x4x16x16xf32>
    %44 = arith.addf %40, %43 : vector<4x4x16x16xf32>
    %45 = vector.shape_cast %44 : vector<4x4x16x16xf32> to vector<4x1x4x16x16xf32>
    %c0_10 = arith.constant 0 : index
    %c0_11 = arith.constant 0 : index
    %c0_12 = arith.constant 0 : index
    %46 = vector.load %arg7[%c0_10, %c0_11, %c0_12] : memref<4x16x16xf32, #tpu.memory_space<vmem>>, vector<4x16x16xf32>
    %47 = vector.shape_cast %46 : vector<4x16x16xf32> to vector<1x1x4x16x16xf32>
    %48 = vector.broadcast %47 : vector<1x1x4x16x16xf32> to vector<4x1x4x16x16xf32>
    %49 = arith.addf %45, %48 : vector<4x1x4x16x16xf32>
    %50 = vector.shape_cast %49 : vector<4x1x4x16x16xf32> to vector<16x16x16xf32>
    %cst_13 = arith.constant dense<0xFF800000> : vector<16x16xf32>
    %51 = vector.multi_reduction <maximumf>, %50, %cst_13 [2] : vector<16x16x16xf32> to vector<16x16xf32>
    %52 = vector.shape_cast %51 : vector<16x16xf32> to vector<16x16x1xf32>
    %53 = vector.broadcast %52 : vector<16x16x1xf32> to vector<16x16x16xf32>
    %54 = arith.subf %50, %53 : vector<16x16x16xf32>
    %55 = math.exp %54 : vector<16x16x16xf32>
    %cst_14 = arith.constant dense<0.000000e+00> : vector<16x16xf32>
    %56 = vector.multi_reduction <add>, %55, %cst_14 [2] : vector<16x16x16xf32> to vector<16x16xf32>
    %57 = vector.shape_cast %56 : vector<16x16xf32> to vector<16x16x1xf32>
    %58 = tpu.reciprocal %57 {approx = true} : vector<16x16x1xf32> -> vector<16x16x1xf32>
    %59 = vector.broadcast %58 : vector<16x16x1xf32> to vector<16x16x16xf32>
    %60 = arith.mulf %55, %59 : vector<16x16x16xf32>
    %61 = arith.truncf %60 : vector<16x16x16xf32> to vector<16x16x16xbf16>
    "tpu.trace_start"() <{level = 10 : i32, message = "gij,gjd->gid"}> : () -> ()
    %cst_15 = arith.constant dense<0.000000e+00> : vector<16x16x8xf32>
    %62 = tpu.matmul %61, %38, %cst_15 {dimension_numbers = #tpu.dot_dimension_numbers<[2], [1], [1], [2], [0, 0, 0, 1, 1, 2], [0], [0]>} : vector<16x16x16xbf16>, vector<16x16x8xbf16>, vector<16x16x8xf32> -> vector<16x16x8xf32>
    "tpu.trace_stop"() : () -> ()
    %63 = arith.truncf %62 : vector<16x16x8xf32> to vector<16x16x8xbf16>
    %64 = vector.shape_cast %63 : vector<16x16x8xbf16> to vector<4x64x8xbf16>
    %65 = vector.extract_strided_slice %64 {offsets = [0, 0, 0], sizes = [1, 64, 8], strides = [1, 1, 1]} : vector<4x64x8xbf16> to vector<1x64x8xbf16>
    %66 = vector.shape_cast %65 : vector<1x64x8xbf16> to vector<64x8xbf16>
    %c0_16 = arith.constant 0 : index
    %c0_17 = arith.constant 0 : index
    %67 = vector.load %arg9[%c0_16, %c0_17] : memref<64x32xbf16, #tpu.memory_space<vmem>>, vector<64x8xbf16>
    tpu.vector_store %arg9[%c0_16, %c0_17], %66 {strides = array<i32>} : memref<64x32xbf16, #tpu.memory_space<vmem>>, vector<64x8xbf16>,
    %68 = vector.extract_strided_slice %64 {offsets = [1, 0, 0], sizes = [1, 64, 8], strides = [1, 1, 1]} : vector<4x64x8xbf16> to vector<1x64x8xbf16>
    %69 = vector.shape_cast %68 : vector<1x64x8xbf16> to vector<64x8xbf16>
    %c0_18 = arith.constant 0 : index
    %c8 = arith.constant 8 : index
    %70 = vector.load %arg9[%c0_18, %c8] : memref<64x32xbf16, #tpu.memory_space<vmem>>, vector<64x8xbf16>
    tpu.vector_store %arg9[%c0_18, %c8], %69 {strides = array<i32>} : memref<64x32xbf16, #tpu.memory_space<vmem>>, vector<64x8xbf16>,
    %71 = vector.extract_strided_slice %64 {offsets = [2, 0, 0], sizes = [1, 64, 8], strides = [1, 1, 1]} : vector<4x64x8xbf16> to vector<1x64x8xbf16>
    %72 = vector.shape_cast %71 : vector<1x64x8xbf16> to vector<64x8xbf16>
    %c0_19 = arith.constant 0 : index
    %c16 = arith.constant 16 : index
    %73 = vector.load %arg9[%c0_19, %c16] : memref<64x32xbf16, #tpu.memory_space<vmem>>, vector<64x8xbf16>
    tpu.vector_store %arg9[%c0_19, %c16], %72 {strides = array<i32>} : memref<64x32xbf16, #tpu.memory_space<vmem>>, vector<64x8xbf16>,
    %74 = vector.extract_strided_slice %64 {offsets = [3, 0, 0], sizes = [1, 64, 8], strides = [1, 1, 1]} : vector<4x64x8xbf16> to vector<1x64x8xbf16>
    %75 = vector.shape_cast %74 : vector<1x64x8xbf16> to vector<64x8xbf16>
    %c0_20 = arith.constant 0 : index
    %c24 = arith.constant 24 : index
    %76 = vector.load %arg9[%c0_20, %c24] : memref<64x32xbf16, #tpu.memory_space<vmem>>, vector<64x8xbf16>
    tpu.vector_store %arg9[%c0_20, %c24], %75 {strides = array<i32>} : memref<64x32xbf16, #tpu.memory_space<vmem>>, vector<64x8xbf16>,
    %c0_21 = arith.constant 0 : index
    %c0_22 = arith.constant 0 : index
    %77 = vector.load %arg9[%c0_21, %c0_22] : memref<64x32xbf16, #tpu.memory_space<vmem>>, vector<64x32xbf16>
    %c0_23 = arith.constant 0 : index
    %c0_24 = arith.constant 0 : index
    %78 = vector.load %arg4[%c0_23, %c0_24] : memref<32x32xbf16, #tpu.memory_space<vmem>>, vector<32x32xbf16>
    %cst_25 = arith.constant dense<0.000000e+00> : vector<64x32xf32>
    %79 = tpu.matmul %77, %78, %cst_25 {dimension_numbers = #tpu.dot_dimension_numbers<[1], [0], [0], [1], [0, 0, 1, 1], [], []>} : vector<64x32xbf16>, vector<32x32xbf16>, vector<64x32xf32> -> vector<64x32xf32>
    %c0_26 = arith.constant 0 : index
    %c0_27 = arith.constant 0 : index
    %80 = vector.load %arg5[%c0_26, %c0_27] : memref<1x32xf32, #tpu.memory_space<vmem>>, vector<1x32xf32>
    %81 = vector.broadcast %80 : vector<1x32xf32> to vector<64x32xf32>
    %82 = arith.addf %79, %81 : vector<64x32xf32>
    %83 = vector.shape_cast %82 : vector<64x32xf32> to vector<4x16x32xf32>
    %c0_28 = arith.constant 0 : index
    %c0_29 = arith.constant 0 : index
    %c0_30 = arith.constant 0 : index
    %84 = vector.load %arg8[%c0_28, %c0_29, %c0_30] : memref<4x16x32xf32, #tpu.memory_space<vmem>>, vector<4x16x32xf32>
    tpu.vector_store %arg8[%c0_28, %c0_29, %c0_30], %83 {strides = array<i32>} : memref<4x16x32xf32, #tpu.memory_space<vmem>>, vector<4x16x32xf32>,
    return
  }
  func.func @transform_0(%arg0: i32) -> (i32, i32, i32) {
    %c0_i32 = arith.constant 0 : i32
    %c0_i32_0 = arith.constant 0 : i32
    %c0_i32_1 = arith.constant 0 : i32
    return %arg0, %c0_i32, %c0_i32_0 : i32, i32, i32
  }
  func.func @transform_1(%arg0: i32) -> (i32, i32) {
    %c0_i32 = arith.constant 0 : i32
    %c0_i32_0 = arith.constant 0 : i32
    %c0_i32_1 = arith.constant 0 : i32
    return %c0_i32, %c0_i32_0 : i32, i32
  }
  func.func @transform_2(%arg0: i32) -> (i32, i32) {
    %c0_i32 = arith.constant 0 : i32
    %c0_i32_0 = arith.constant 0 : i32
    %c0_i32_1 = arith.constant 0 : i32
    return %c0_i32, %c0_i32_0 : i32, i32
  }
  func.func @transform_3(%arg0: i32) -> (i32, i32) {
    %c0_i32 = arith.constant 0 : i32
    %c0_i32_0 = arith.constant 0 : i32
    %c0_i32_1 = arith.constant 0 : i32
    return %c0_i32, %c0_i32_0 : i32, i32
  }
  func.func @transform_4(%arg0: i32) -> (i32, i32) {
    %c0_i32 = arith.constant 0 : i32
    %c0_i32_0 = arith.constant 0 : i32
    %c0_i32_1 = arith.constant 0 : i32
    return %c0_i32, %c0_i32_0 : i32, i32
  }
  func.func @transform_5(%arg0: i32) -> (i32, i32, i32) {
    %c0_i32 = arith.constant 0 : i32
    %c0_i32_0 = arith.constant 0 : i32
    %c0_i32_1 = arith.constant 0 : i32
    %c0_i32_2 = arith.constant 0 : i32
    return %c0_i32, %c0_i32_0, %c0_i32_1 : i32, i32, i32
  }
  func.func @transform_6(%arg0: i32) -> (i32, i32, i32) {
    %c0_i32 = arith.constant 0 : i32
    %c0_i32_0 = arith.constant 0 : i32
    %c0_i32_1 = arith.constant 0 : i32
    %c0_i32_2 = arith.constant 0 : i32
    return %c0_i32, %c0_i32_0, %c0_i32_1 : i32, i32, i32
  }
  func.func @transform_7(%arg0: i32) -> (i32, i32, i32) {
    %c0_i32 = arith.constant 0 : i32
    %c0_i32_0 = arith.constant 0 : i32
    %c0_i32_1 = arith.constant 0 : i32
    return %arg0, %c0_i32, %c0_i32_0 : i32, i32, i32
  }
}

</mosaic_0001>

<bundles_post_ra>
// kernel: tpu_custom_call.1
= control target key start
LH: loop header
LB: loop body
LE: loop exit
PB: predicated region body
PF: predicated region fallthrough
CT: control target
= control target key end

     0   :  { %s4885_s0 = inlined_call_operand.hbm [shape: f32[8,16,32], index: 0, kind: input, shape index: {}]   ;;  %s4886_s1 = inlined_call_operand.hbm [shape: bf16[32,96], index: 1, kind: input, shape index: {}]   ;;  %s4887_s2 = inlined_call_operand.vmem [shape: f32[1,96], index: 2, kind: input, shape index: {}]   ;;  %s4888_s3 = inlined_call_operand.hbm [shape: bf16[32,32], index: 3, kind: input, shape index: {}]   ;;  %s4889_s4 = inlined_call_operand.vmem [shape: f32[1,32], index: 4, kind: input, shape index: {}]   ;;  %s4890_s5 = inlined_call_operand.hbm [shape: f32[4,16,16], index: 5, kind: input, shape index: {}]   ;;  %s4891_s6 = inlined_call_operand.hbm [shape: f32[4,16,16], index: 6, kind: input, shape index: {}]   ;;  %s4892_s7 = inlined_call_operand.hbm [shape: f32[8,16,32], index: 7, kind: output, shape index: {}]  }
   0x1   :  { %4899 = sst [smem:[#allocation17_spill]] %s4886_s1 }
   0x2   :  { %12 = vsyncpa [#allocation4], 0 }
   0x3   :  { %14 = vsyncpa [#allocation4 + $0x1], 0 }
   0x4   :  { %15 = vsyncpa [#allocation7], 0 }
   0x5   :  { %16 = vsyncpa [#allocation10], 0 }
   0x6   :  { %17 = vsyncpa [#allocation5], 0 }
   0x7   :  { %19 = vsyncpa [#allocation5 + $0x1], 0  ;;  %s3907_s24 = smov 0   ;;  %s3909_s25 = smov 0  }
   0x8   :  { %s3911_s26 = smov 0   ;;  %s3913_s27 = smov 0  }
   0x9 LB: > { %s3928_s28 = sadd.s32 4294967295, %s3844_s27   ;;  %s2964_s29 = sadd.s32 4294967294, %s3844_s27   ;;  %s3844_s27 = sphi %s3913_s27, %s4922_s27   ;;  %s3840_s26 = sphi %s3911_s26, %s4921_s26   ;;  %s3836_s25 = sphi %s3909_s25, %s4920_s25   ;;  %s3832_s24 = sphi %s3907_s24, %s4919_s24  }
   0xa   : > { %p45_p0 = scmp.ne.s32.totalorder %s3836_s25, %s3832_s24  ;;  %p4893_p1 = scmp.eq.s32.totalorder %s3928_s28, 0 }
   0xb   : > { %p201_p3 = scmp.eq.s32.totalorder %s2964_s29, 1  ;;  %p2965_p5 = scmp.ge.s32.totalorder %s3844_s27, 1 }
   0xc   : > { %p3937_p4 = por %p4893_p1, %p45_p0  ;;  %p208_p7 = scmp.lt.s32.totalorder %s3844_s27, 3 }
   0xd   : > { %p3942_p6 = por %p201_p3, %p45_p0  ;;  %s3846_s10 = smov [#allocation6]  }
   0xe   : > { %s4900_s30 = scalar_select %p3937_p4, 1, 0 }
   0xf   : > { %s4901_s8 = scalar_select %p3942_p6, 1, 0 }
  0x10   : > { %p3947_p8 = pnand %p2965_p5, %p208_p7  ;;  %s220_s11 = sshll.u32 %s3846_s10, 4  ;;  %s221_s11 = int_to_ptr.vmem [resolvable:$true] %s220_s11 }
  0x11   : > { %s3847_s13 = smov [#allocation9]   ;;  %s3651_s15 = scalar_lea.vmem %s221_s11, 256 }
  0x12   : > { %s4902_s9 = scalar_select %p3947_p8, 1, 0 }
  0x13   : > { %p3422_p9 = pneg %p3947_p8  ;;  %s252_s14 = sshll.u32 %s3847_s13, 4  ;;  %s253_s14 = int_to_ptr.vmem [resolvable:$true] %s252_s14 }
  0x14   : > { %p3652_p13 = scmp.ne.s32.totalorder %s221_s11, %s3651_s15  ;;  %p3659_p5 = scmp.lt.s32.totalorder %s221_s11, %s221_s11 }
  0x15   : > { %p3956_p11 = pnand %p3422_p9, %p4893_p1  ;;  %p3660_p7 = scmp.lt.s32.totalorder %s3651_s15, %s3651_s15 }
  0x17   : > { %p3642_p12 = pneg %p3956_p11  ;;  %p3661_p10 = por %p3660_p7, %p3659_p5 }
  0x19   : > { %p3654_p0 = pnand %p3652_p13, %p3642_p12 }
  0x1b   : > { %p3655_p3 = pneg %p3654_p0 }
  0x1d   : > { %p3662_p9 = pnand %p3661_p10, %p3655_p3 }
  0x1f   : > { %3665 = shalt.err (!%p3662_p9)
}
  0x20   : > { %s3848_s16 = smov 64   ;;  %s3849_s17 = smov 4  }
  0x21   : > { %s4904_s1 = sld [smem:[#allocation17_spill]]  ;;  %s3677_s20 = scalar_lea.vmem %s253_s14, 1024 }
  0x22   : > { %p3678_p13 = scmp.ne.s32.totalorder %s253_s14, %s3677_s20  ;;  %p3685_p10 = scmp.lt.s32.totalorder %s253_s14, %s253_s14 }
  0x23   : > { %p3686_p3 = scmp.lt.s32.totalorder %s3677_s20, %s3677_s20 }
  0x24   : > { %p3680_p0 = pnand %p3678_p13, %p3642_p12 }
  0x25   : > { %p3687_p7 = por %p3686_p3, %p3685_p10 }
  0x26   : > { %p3681_p5 = pneg %p3680_p0 }
  0x27   : > { %3425 = dma.hbm_to_vmem [thread:$0]  (!%p3956_p11), %s4904_s1, 256, %s221_s11, [#allocation7], %s3848_s16, %s3848_s16, %s3849_s17  }
  0x28   : > { %p3688_p9 = pnand %p3687_p7, %p3681_p5 }
  0x2a   : > { %3691 = shalt.err (!%p3688_p9)
}
  0x2b   : > { %s4894_s21 = smov 128   ;;  %s4895_s22 = smov 8  }
  0x2c   : > { %3431 = dma.hbm_to_vmem [thread:$0]  (!%p3956_p11), %s4890_s5, 1024, %s253_s14, [#allocation10], %s4894_s21, %s4894_s21, %s4895_s22  }
  0x2d   : > { %s3852_s10 = smov [#allocation8]   ;;  %s3853_s13 = smov [#allocation11]  }
  0x2e   : > { %s236_s11 = sshll.u32 %s3852_s10, 4  ;;  %s265_s15 = sshll.u32 %s3853_s13, 4  ;;  %s237_s11 = int_to_ptr.vmem [resolvable:$true] %s236_s11  ;;  %s266_s15 = int_to_ptr.vmem [resolvable:$true] %s265_s15 }
  0x2f   : > { %s3703_s18 = scalar_lea.vmem %s237_s11, 256  ;;  %p3711_p10 = scmp.lt.s32.totalorder %s237_s11, %s237_s11 }
  0x30   : > { %p3704_p13 = scmp.ne.s32.totalorder %s237_s11, %s3703_s18  ;;  %p3712_p3 = scmp.lt.s32.totalorder %s3703_s18, %s3703_s18 }
  0x32   : > { %p3706_p0 = pnand %p3704_p13, %p3642_p12  ;;  %p3713_p7 = por %p3712_p3, %p3711_p10 }
  0x34   : > { %p3707_p5 = pneg %p3706_p0 }
  0x36   : > { %p3714_p9 = pnand %p3713_p7, %p3707_p5 }
  0x38   : > { %3717 = shalt.err (!%p3714_p9)
}
  0x39   : > { %3428 = dma.hbm_to_vmem [thread:$0]  (!%p3956_p11), %s4888_s3, 256, %s237_s11, [#allocation7], %s3848_s16, %s3848_s16, %s3849_s17  }
  0x3a   : > { %s3729_s20 = scalar_lea.vmem %s266_s15, 1024  ;;  %p3737_p2 = scmp.lt.s32.totalorder %s266_s15, %s266_s15 }
  0x3b   : > { %p3730_p1 = scmp.ne.s32.totalorder %s266_s15, %s3729_s20  ;;  %p3738_p10 = scmp.lt.s32.totalorder %s3729_s20, %s3729_s20 }
  0x3d   : > { %p3732_p13 = pnand %p3730_p1, %p3642_p12  ;;  %p3739_p5 = por %p3738_p10, %p3737_p2 }
  0x3f   : > { %p3733_p0 = pneg %p3732_p13 }
  0x41   : > { %p3740_p3 = pnand %p3739_p5, %p3733_p0 }
  0x43   : > { %3743 = shalt.err (!%p3740_p3)
}
  0x44   : > { %3434 = dma.hbm_to_vmem [thread:$0]  (!%p3956_p11), %s4891_s6, 1024, %s266_s15, [#allocation10], %s4894_s21, %s4894_s21, %s4895_s22  }
  0x45   : > { %s4007_s16 = sadd.s32 1, %s3844_s27   ;;  %s32_s17 = sadd.s32 1, %s3840_s26 }
  0x46   : > { %s29_s12 = ssub.s32 %s3844_s27, %s4007_s16  ;;  %p39_p2 = scmp.ne.s32.totalorder %s3840_s26, %s3836_s25 }
  0x47   : > { %p30_p1 = scmp.eq.s32.totalorder %s29_s12, 0  ;;  %p40_p12 = scmp.eq.s32.totalorder %s3844_s27, 0 }
  0x48   : > { %p4905_p9 = scmp.eq.s32.totalorder %s3928_s28, 1  ;;  %p3447_p0 = scmp.lt.s32.totalorder %s3844_s27, 2 }
  0x49   : > { %s4016_s10 = scalar_select %p30_p1, %s3840_s26, %s32_s17  }
  0x4a   : > { %p41_p7 = por %p40_p12, %p39_p2  ;;  %p4020_p13 = por %p4905_p9, %p39_p2 }
  0x4b   : > { %s279_s13 = sand.u32 1, %s3840_s26   ;;  %s3071_s15 = sshll.u32 %s3844_s27, 10 }
  0x4c   : > { %s4906_s11 = scalar_select %p4020_p13, 1, 0 }
  0x4d   : > { %s2971_s18 = sshll.u32 %s279_s13, 6  ;;  %s4030_s20 = scalar_lea.hbm %s4885_s0, %s3071_s15 }
  0x4e   : > { %s283_s23 = scalar_lea.vmem [#allocation3], %s2971_s18  ;;  %p4034_p11 = pnand %p3447_p0, %p41_p7 }
  0x4f   : > { %s291_s29 = sshll.u32 %s283_s23, 4  ;;  %s4038_s17 = scalar_lea.sflag [#allocation4], %s279_s13  ;;  %s4032_s29 = int_to_ptr.vmem [resolvable:$true] %s291_s29 }
  0x50   : > { %s3744_s21 = scalar_lea.hbm %s4030_s20, 1024  ;;  %p3746_p5 = pneg %p4034_p11 }
  0x51   : > { %p3745_p10 = scmp.ne.s32.totalorder %s4030_s20, %s3744_s21  ;;  %s3749_s18 = scalar_lea.hbm %s4885_s0, 2048 }
  0x52   : > { %p3750_p2 = scmp.lt.s32.totalorder %s4030_s20, %s4885_s0  ;;  %p3751_p12 = scmp.lt.s32.totalorder %s3749_s18, %s3744_s21 }
  0x53   : > { %p3747_p3 = pnand %p3746_p5, %p3745_p10 }
  0x54   : > { %p3752_p7 = por %p3751_p12, %p3750_p2 }
  0x55   : > { %p3748_p1 = pneg %p3747_p3 }
  0x57   : > { %p3753_p9 = pnand %p3752_p7, %p3748_p1 }
  0x59   : > { %3756 = shalt.err (!%p3753_p9)
}
  0x5a   : > { %s3757_s13 = scalar_lea.vmem %s4032_s29, 1024  ;;  %s3854_s22 = smov [#allocation3]  }
  0x5b   : > { %p3758_p0 = scmp.ne.s32.totalorder %s4032_s29, %s3757_s13  ;;  %s3762_s1 = sshll.u32 %s3854_s22, 4  ;;  %s3763_s1 = int_to_ptr.vmem [resolvable:$false] %s3762_s1 }
  0x5c   : > { %s3764_s15 = scalar_lea.vmem %s3763_s1, 2048  ;;  %p3765_p3 = scmp.lt.s32.totalorder %s4032_s29, %s3763_s1 }
  0x5d   : > { %p3760_p6 = pnand %p3758_p0, %p3746_p5  ;;  %p3766_p13 = scmp.lt.s32.totalorder %s3764_s15, %s3757_s13 }
  0x5f   : > { %p3761_p10 = pneg %p3760_p6  ;;  %p3767_p4 = por %p3766_p13, %p3765_p3 }
  0x61   : > { %p3768_p8 = pnand %p3767_p4, %p3761_p10 }
  0x63   : > { %3771 = shalt.err (!%p3768_p8)
}
  0x64   : > { %s4908_s21 = smov 8   ;;  %s4909_s14 = smov 128  }
  0x65   : > { %3438 = dma.hbm_to_vmem [thread:$0]  (!%p4034_p11), %s4030_s20, 1024, %s4032_s29, %s4038_s17, %s4909_s14, %s4909_s14, %s4908_s21  }
  0x66   : > { %p4910_p6 = scmp.ne.s32.totalorder %s4902_s9, 0 }
  0x67   : > { %s4065_s22 = sand.u32 (!%p4910_p6), 1, %s3836_s25   ;;  %p4911_p4 = scmp.ne.s32.totalorder (!%p4910_p6), %s4900_s30, 0 }
  0x68   : > { %303 = sbr.rel (%p4910_p6) target bundleno = 1671 (0x687), region = 48  ;;  %s2976_s1 = sshll.u32 (!%p4910_p6), %s4065_s22, 6 }
  0x69   : > { %s306_s18 = scalar_lea.sflag (!%p4910_p6), [#allocation4], %s4065_s22  ;;  %s309_s12 = scalar_lea.vmem (!%p4910_p6), [#allocation3], %s2976_s1 }
  0x6d   : > { %3815 = dma.done.wait (%p4911_p4), %s306_s18, 1024  }
  0x6e   : > { %3817 = vsyncadd (%p4911_p4), %s306_s18, 4294966272  ;;  %p4912_p8 = scmp.eq.s32.totalorder %s3928_s28, 0 }
  0x70   : > { %3819 = dma.done.wait (%p4912_p8), [#allocation7], 512   ;;  %p4913_p13 = pmov %p4912_p8 }
  0x71   : > { %p4914_p11 = pmov %p4912_p8 }
  0x72   : > { %3821 = vsyncadd (%p4913_p13), [#allocation7], 4294966784 }
  0x73   : > { %3823 = dma.done.wait (%p4914_p11), [#allocation10], 2048   ;;  %p4915_p5 = pmov %p4912_p8 }
  0x74   : > { %v3504_v0 = vld [vmem:[#allocation6 + $0x8] sm:$0xff]   ;;  %v3505_v1 = vld [vmem:[#allocation6] sm:$0xff]   ;;  %vm394_vm0 = vcmask 261120   ;;  %v361_v7 = vld [vmem:[%s309_s12 + $0x10] sm:$0xff]  ;;  %s3855_s20 = smov 120   ;;  %v3856_v35 = vmov 0.0  }
  0x75   : > { %3825 = vsyncadd (%p4915_p5), [#allocation10], 4294965248  ;;  %3182 = vmatprep.subr.bf16.mxu0 %v3504_v0  ;;  %3398 = vmatprep.subr.bf16.mxu1 %v3504_v0  ;;  %v359_v2 = vld [vmem:[%s309_s12] sm:$0xff]  ;;  %v360_v3 = vld [vmem:[%s309_s12 + $0x8] sm:$0xff]  ;;  %s3857_s29 = smov 112   ;;  %vm3858_vm1 = vmmov 0  }
  0x76   : > { %v363_v4 = vld [vmem:[%s309_s12 + $0x20] sm:$0xff]  ;;  %3183 = vmatpush3.bf16.msra.mxu0 %v3504_v0  ;;  %3400 = vmatpush3.bf16.msra.mxu1 %v3504_v0  ;;  %v367_v5 = vpack.c.bf16 %v360_v3, %v359_v2  ;;  %v364_v6 = vld [vmem:[%s309_s12 + $0x28] sm:$0xff]  ;;  %v362_v8 = vld [vmem:[%s309_s12 + $0x18] sm:$0xff]  ;;  %s3859_s17 = smov 104   ;;  %s3860_s19 = smov 96   ;;  %vm506_vm2 = vcmask 64512  }
  0x77   : > { %3184 = vmatprep.subr.bf16.mxu0 %v3505_v1  ;;  %3399 = vmatprep.subr.bf16.mxu1 %v3505_v1  ;;  %v369_v9 = vpack.c.bf16 %v364_v6, %v363_v4  ;;  %v365_v10 = vld [vmem:[%s309_s12 + $0x30] sm:$0xff]  ;;  %v366_v11 = vld [vmem:[%s309_s12 + $0x38] sm:$0xff]  ;;  %v368_v12 = vpack.c.bf16 %v362_v8, %v361_v7  ;;  %v2982_v18 = vld [vmem:[%s4887_s2] ss:$0 sm:$0xff]  ;;  %s3861_s23 = smov 64   ;;  %vm1369_vm3 = vcmask 130048  }
  0x78   : > { %3186 = vmatprep.mubr.msk.bf16.mxu0 %vm394_vm0, %v367_v5  ;;  %v370_v13 = vpack.c.bf16 %v366_v11, %v365_v10  ;;  %vm2534_vm4 = vcmask 60416   ;;  %s3862_s13 = smov 8   ;;  %s3863_s15 = smov 16   ;;  %vm2587_vm5 = vcmask 126016   ;;  %vm2640_vm6 = vcmask 191616  }
  0x79   : > { %3190 = vmatprep.mubr.msk.bf16.mxu1 %vm394_vm0, %v369_v9  ;;  %s3864_s21 = smov 24   ;;  %vm2693_vm7 = vcmask 257216   ;;  %s355_s12 = scalar_lea.vmem [#allocation12], %s2976_s1 }
  0x7a   : > { %3185 = vmatpush3.bf16.msra.mxu0 %v3505_v1  ;;  %3401 = vmatpush3.bf16.msra.mxu1 %v3505_v1  ;;  %s3105_s1 = sshll.u32 %s3928_s28, 10  ;;  %s2853_s30 = sshll.u32 %s355_s12, 4  ;;  %s4840_s30 = int_to_ptr.vmem [resolvable:$true] %s2853_s30 }
  0x7b   : > { %3194 = vmatprep.subr.bf16.mxu1 %v3856_v35  ;;  %3206 = vmatprep.subr.bf16.mxu0 %v3856_v35  ;;  %s2839_s28 = scalar_lea.sflag [#allocation5], %s4065_s22  ;;  %p4916_p2 = scmp.ne.s32.totalorder %s4906_s11, 0 }
  0x7d   : > { %3187 = vmatmul.mubr.msk.bf16.vlgmr.msra.gmra.mxu0 %vm394_vm0, %v368_v12  ;;  %3191 = vmatmul.mubr.msk.bf16.vlgmr.msra.gmra.mxu1 %vm394_vm0, %v370_v13 }
  0x7e   : > { %3196 = vmatprep.mubr.msk.bf16.mxu1 %vm3858_vm1, %v3856_v35  ;;  %3208 = vmatprep.mubr.msk.bf16.mxu0 %vm3858_vm1, %v3856_v35 }
 0x13d   : > { %v3188_v14 = vpop.f32.mrf.mxu0  ;;  %v3192_v15 = vpop.f32.mrf.mxu1 }
 0x13e   : > { %v466_v27 = vadd.f32 %v3192_v15, %v2982_v18  ;;  %v450_v32 = vadd.f32 %v3188_v14, %v2982_v18 }
 0x13f   : > { %v441_v16 = vpop.f32.mrf.mxu0  ;;  %v457_v17 = vpop.f32.mrf.mxu1 }
 0x140   : > { %v458_v21 = vadd.f32 %v2982_v18, %v457_v17  ;;  %v442_v24 = vadd.f32 %v2982_v18, %v441_v16 }
 0x141   : > { %v3189_v19 = vpop.f32.mrf.mxu0  ;;  %v3193_v20 = vpop.f32.mrf.mxu1 }
 0x142   : > { %v453_v28 = vadd.f32 %v3189_v19, %v2982_v18  ;;  %v469_v29 = vadd.f32 %v3193_v20, %v2982_v18  ;;  %v4294_v20 = vld [vmem:[#allocation11] sm:$0xff] }
 0x143   : > { %v444_v22 = vpop.f32.mrf.mxu0  ;;  %v460_v23 = vpop.f32.mrf.mxu1 }
 0x144   : > { %v445_v25 = vadd.f32 %v2982_v18, %v444_v22  ;;  %v461_v26 = vadd.f32 %v2982_v18, %v460_v23  ;;  %v4096_v33 = vpack.c.bf16 %v453_v28, %v450_v32  ;;  %v4098_v34 = vpack.c.bf16 %v469_v29, %v466_v27  ;;  %v1289_v18 = vld [vmem:[#allocation9] sm:$0xff] }
 0x146   : > { %v4090_v30 = vpack.c.bf16 %v445_v25, %v442_v24  ;;  %v4092_v31 = vpack.c.bf16 %v461_v26, %v458_v21  ;;  %v1290_v26 = vld [vmem:[#allocation9 + $0x8] sm:$0xff] }
 0x148   : > { %484 = vrot.lane.b32.xlu1 %v4092_v31, %s3855_s20  ;;  %480 = vrot.lane.b32.xlu0 %v4090_v30, %s3855_s20 }
 0x14c   : > { %486 = vrot.lane.b32.xlu1 %v4098_v34, %s3855_s20  ;;  %482 = vrot.lane.b32.xlu0 %v4096_v33, %s3855_s20 }
 0x150   : > { %490 = vrot.lane.b32.xlu1 %v4096_v33, %s3857_s29  ;;  %488 = vrot.lane.b32.xlu0 %v4090_v30, %s3857_s29 }
 0x154   : > { %494 = vrot.lane.b32.xlu1 %v4098_v34, %s3857_s29  ;;  %492 = vrot.lane.b32.xlu0 %v4092_v31, %s3857_s29  ;;  %s4837_s29 = scalar_lea.hbm %s4892_s7, %s3105_s1 }
 0x158   : > { %498 = vrot.lane.b32.xlu1 %v4096_v33, %s3859_s17  ;;  %496 = vrot.lane.b32.xlu0 %v4090_v30, %s3859_s17 }
 0x15c   : > { %500 = vrot.lane.b32.xlu1 %v4092_v31, %s3859_s17  ;;  %504 = vrot.lane.b32.xlu0 %v4090_v30, %s3860_s19 }
 0x160   : > { %554 = vrot.lane.b32.xlu1 %v4096_v33, %s3860_s19  ;;  %502 = vrot.lane.b32.xlu0 %v4098_v34, %s3859_s17  ;;  %s3772_s17 = scalar_lea.vmem %s4840_s30, 1024 }
 0x161   : > { %p3773_p1 = scmp.ne.s32.totalorder %s4840_s30, %s3772_s17 }
 0x163   : > { %p3774_p12 = pnand %p3773_p1, %p4916_p2 }
 0x164   : > { %652 = vrot.lane.b32.xlu1 %v4098_v34, %s3860_s19  ;;  %603 = vrot.lane.b32.xlu0 %v4092_v31, %s3860_s19 }
 0x165   : > { %p3775_p7 = pneg %p3774_p12 }
 0x1ba   : > { %v4124_v36 = vpop.permute.xlu1 %484  ;;  %v4126_v37 = vpop.permute.xlu0 %480 }
 0x1bb   : > { %701 = vrot.lane.b32.xlu0 %v4126_v37, %s3860_s19 }
 0x1be   : > { %v4130_v38 = vpop.permute.xlu1 %486  ;;  %v4132_v39 = vpop.permute.xlu0 %482 }
 0x1bf   : > { %799 = vrot.lane.b32.xlu0 %v4124_v36, %s3860_s19  ;;  %750 = vrot.lane.b32.xlu1 %v4132_v39, %s3860_s19 }
 0x1c2   : > { %v4138_v40 = vpop.permute.xlu1 %490  ;;  %v4140_v41 = vpop.permute.xlu0 %488 }
 0x1c3   : > { %848 = vrot.lane.b32.xlu1 %v4130_v38, %s3860_s19  ;;  %897 = vrot.lane.b32.xlu0 %v4140_v41, %s3860_s19 }
 0x1c6   : > { %v4146_v42 = vpop.permute.xlu1 %494  ;;  %v4148_v43 = vpop.permute.xlu0 %492 }
 0x1c7   : > { %946 = vrot.lane.b32.xlu1 %v4138_v40, %s3860_s19  ;;  %995 = vrot.lane.b32.xlu0 %v4148_v43, %s3860_s19 }
 0x1ca   : > { %v4154_v44 = vpop.permute.xlu1 %498  ;;  %v4156_v45 = vpop.permute.xlu0 %496 }
 0x1cb   : > { %1044 = vrot.lane.b32.xlu1 %v4146_v42, %s3860_s19  ;;  %1093 = vrot.lane.b32.xlu0 %v4156_v45, %s3860_s19 }
 0x1ce   : > { %v4162_v46 = vpop.permute.xlu1 %500  ;;  %v505_v47 = vpop.permute.xlu0 %504 }
 0x1cf   : > { %v511_v48 = vsel %vm506_vm2, %v505_v47, 0  ;;  %1142 = vrot.lane.b32.xlu1 %v4154_v44, %s3860_s19  ;;  %1191 = vrot.lane.b32.xlu0 %v4162_v46, %s3860_s19 }
 0x1d0   : > { %3195 = vmatpush3.bf16.xpose.msra.mxu1 %v511_v48 }
 0x1d1   : > { %3200 = vmatprep.subr.bf16.mxu1 %v3856_v35 }
 0x1d2   : > { %v4170_v49 = vpop.permute.xlu0 %502  ;;  %v555_v50 = vpop.permute.xlu1 %554 }
 0x1d3   : > { %1785 = vrot.lane.b32.xlu0 %v4096_v33, %s3861_s23  ;;  %1240 = vrot.lane.b32.xlu1 %v4170_v49, %s3860_s19  ;;  %v560_v52 = vsel %vm506_vm2, %v555_v50, 0  ;;  %s3865_s19 = smov [#allocation12]  }
 0x1d6   : > { %v604_v51 = vpop.permute.xlu0 %603  ;;  %v653_v54 = vpop.permute.xlu1 %652 }
 0x1d7   : > { %v609_v53 = vsel %vm506_vm2, %v604_v51, 0  ;;  %1879 = vrot.lane.b32.xlu0 %v4098_v34, %s3861_s23  ;;  %3197 = vmatmul.mubr.msk.bf16.vlgmr.msra.gmra.mxu1 %vm506_vm2, %v4090_v30  ;;  %v658_v55 = vsel %vm506_vm2, %v653_v54, 0  ;;  %v4315_v51 = vld [vmem:[#allocation11 + $0x10] sm:$0xff] }
 0x1d8   : > { %1738 = vrot.lane.b32.xlu1 %v4090_v30, %s3861_s23  ;;  %3201 = vmatpush3.bf16.xpose.msra.mxu1 %v560_v52 }
 0x1d9   : > { %3207 = vmatpush3.bf16.xpose.msra.mxu0 %v609_v53  ;;  %3202 = vmatprep.mubr.msk.bf16.mxu1 %vm3858_vm1, %v3856_v35 }
 0x1da   : > { %3212 = vmatprep.subr.bf16.mxu1 %v3856_v35  ;;  %3218 = vmatprep.subr.bf16.mxu0 %v3856_v35 }
 0x1db   : > { %1973 = vrot.lane.b32.xlu0 %v4132_v39, %s3861_s23 }
 0x1dc   : > { %1832 = vrot.lane.b32.xlu1 %v4092_v31, %s3861_s23 }
 0x1df   : > { %2067 = vrot.lane.b32.xlu0 %v4130_v38, %s3861_s23  ;;  %3203 = vmatmul.mubr.msk.bf16.vlgmr.msra.gmra.mxu1 %vm506_vm2, %v4096_v33 }
 0x1e0   : > { %2255 = vrot.lane.b32.xlu1 %v4146_v42, %s3861_s23  ;;  %3209 = vmatmul.mubr.msk.bf16.vlgmr.msra.gmra.mxu0 %vm506_vm2, %v4092_v31  ;;  %v4301_v31 = vld [vmem:[#allocation11 + $0x20] sm:$0xff] }
 0x1e1   : > { %3213 = vmatpush3.bf16.xpose.msra.mxu1 %v658_v55  ;;  %3214 = vmatprep.mubr.msk.bf16.mxu1 %vm3858_vm1, %v3856_v35  ;;  %v4322_v55 = vld [vmem:[#allocation11 + $0x30] sm:$0xff] }
 0x1e2   : > { %3224 = vmatprep.subr.bf16.mxu1 %v3856_v35  ;;  %3220 = vmatprep.mubr.msk.bf16.mxu0 %vm3858_vm1, %v3856_v35 }
 0x1e3   : > { %2161 = vrot.lane.b32.xlu0 %v4138_v40, %s3861_s23 }
 0x1e4   : > { %1926 = vrot.lane.b32.xlu1 %v4126_v37, %s3861_s23 }
 0x1e8   : > { %3215 = vmatmul.mubr.msk.bf16.vlgmr.msra.gmra.mxu1 %vm506_vm2, %v4098_v34  ;;  %2020 = vrot.lane.b32.xlu1 %v4124_v36, %s3861_s23  ;;  %v4303_v34 = vld [vmem:[#allocation11 + $0x8] sm:$0xff] }
 0x1e9   : > { %3226 = vmatprep.mubr.msk.bf16.mxu1 %vm3858_vm1, %v3856_v35 }
 0x1ec   : > { %2114 = vrot.lane.b32.xlu1 %v4140_v41, %s3861_s23 }
 0x1f0   : > { %2208 = vrot.lane.b32.xlu1 %v4148_v43, %s3861_s23 }
 0x22d   : > { %v702_v56 = vpop.permute.xlu0 %701 }
 0x22e   : > { %v707_v57 = vsel %vm506_vm2, %v702_v56, 0 }
 0x22f   : > { %3219 = vmatpush3.bf16.xpose.msra.mxu0 %v707_v57 }
 0x230   : > { %3230 = vmatprep.subr.bf16.mxu0 %v3856_v35 }
 0x231   : > { %v751_v58 = vpop.permute.xlu1 %750  ;;  %v800_v60 = vpop.permute.xlu0 %799 }
 0x232   : > { %v756_v59 = vsel %vm506_vm2, %v751_v58, 0  ;;  %v805_v61 = vsel %vm506_vm2, %v800_v60, 0 }
 0x233   : > { %3225 = vmatpush3.bf16.xpose.msra.mxu1 %v756_v59 }
 0x234   : > { %3236 = vmatprep.subr.bf16.mxu1 %v3856_v35 }
 0x235   : > { %v849_v62 = vpop.permute.xlu1 %848  ;;  %v898_v0 = vpop.permute.xlu0 %897 }
 0x236   : > { %3221 = vmatmul.mubr.msk.bf16.vlgmr.msra.gmra.mxu0 %vm506_vm2, %v4126_v37  ;;  %v854_v63 = vsel %vm506_vm2, %v849_v62, 0  ;;  %v903_v1 = vsel %vm506_vm2, %v898_v0, 0 }
 0x237   : > { %3231 = vmatpush3.bf16.xpose.msra.mxu0 %v805_v61  ;;  %3232 = vmatprep.mubr.msk.bf16.mxu0 %vm3858_vm1, %v3856_v35  ;;  %v4329_v61 = vld [vmem:[#allocation11 + $0x18] sm:$0xff] }
 0x238   : > { %3242 = vmatprep.subr.bf16.mxu0 %v3856_v35 }
 0x239   : > { %v947_v2 = vpop.permute.xlu1 %946  ;;  %v996_v4 = vpop.permute.xlu0 %995 }
 0x23a   : > { %3227 = vmatmul.mubr.msk.bf16.vlgmr.msra.gmra.mxu1 %vm506_vm2, %v4132_v39  ;;  %v952_v3 = vsel %vm506_vm2, %v947_v2, 0  ;;  %v1001_v5 = vsel %vm506_vm2, %v996_v4, 0 }
 0x23b   : > { %3237 = vmatpush3.bf16.xpose.msra.mxu1 %v854_v63  ;;  %3238 = vmatprep.mubr.msk.bf16.mxu1 %vm3858_vm1, %v3856_v35 }
 0x23c   : > { %3248 = vmatprep.subr.bf16.mxu1 %v3856_v35 }
 0x23d   : > { %v1045_v6 = vpop.permute.xlu1 %1044  ;;  %v1094_v8 = vpop.permute.xlu0 %1093 }
 0x23e   : > { %3233 = vmatmul.mubr.msk.bf16.vlgmr.msra.gmra.mxu0 %vm506_vm2, %v4124_v36  ;;  %v1050_v7 = vsel %vm506_vm2, %v1045_v6, 0  ;;  %v1099_v9 = vsel %vm506_vm2, %v1094_v8, 0 }
 0x23f   : > { %3243 = vmatpush3.bf16.xpose.msra.mxu0 %v903_v1  ;;  %3244 = vmatprep.mubr.msk.bf16.mxu0 %vm3858_vm1, %v3856_v35 }
 0x240   : > { %3254 = vmatprep.subr.bf16.mxu0 %v3856_v35 }
 0x241   : > { %v1143_v10 = vpop.permute.xlu1 %1142  ;;  %v1192_v12 = vpop.permute.xlu0 %1191 }
 0x242   : > { %3239 = vmatmul.mubr.msk.bf16.vlgmr.msra.gmra.mxu1 %vm506_vm2, %v4130_v38  ;;  %v1148_v11 = vsel %vm506_vm2, %v1143_v10, 0  ;;  %v1197_v13 = vsel %vm506_vm2, %v1192_v12, 0  ;;  %v1291_v10 = vld [vmem:[#allocation9 + $0x10] sm:$0xff] }
 0x243   : > { %3249 = vmatpush3.bf16.xpose.msra.mxu1 %v952_v3  ;;  %3250 = vmatprep.mubr.msk.bf16.mxu1 %vm3858_vm1, %v3856_v35 }
 0x244   : > { %3260 = vmatprep.subr.bf16.mxu1 %v3856_v35 }
 0x245   : > { %v1241_v14 = vpop.permute.xlu1 %1240  ;;  %v1786_v17 = vpop.permute.xlu0 %1785 }
 0x246   : > { %3245 = vmatmul.mubr.msk.bf16.vlgmr.msra.gmra.mxu0 %vm506_vm2, %v4140_v41  ;;  %v1246_v15 = vsel %vm506_vm2, %v1241_v14, 0  ;;  %v4311_v41 = vld [vmem:[#allocation11 + $0x28] sm:$0xff] }
 0x247   : > { %3255 = vmatpush3.bf16.xpose.msra.mxu0 %v1001_v5  ;;  %3256 = vmatprep.mubr.msk.bf16.mxu0 %vm3858_vm1, %v3856_v35  ;;  %v4341_v5 = vld [vmem:[#allocation11 + $0x38] sm:$0xff] }
 0x248   : > { %3266 = vmatprep.subr.bf16.mxu0 %v3856_v35 }
 0x24a   : > { %3251 = vmatmul.mubr.msk.bf16.vlgmr.msra.gmra.mxu1 %vm506_vm2, %v4138_v40  ;;  %v1739_v16 = vpop.permute.xlu1 %1738 }
 0x24b   : > { %3261 = vmatpush3.bf16.xpose.msra.mxu1 %v1050_v7  ;;  %3262 = vmatprep.mubr.msk.bf16.mxu1 %vm3858_vm1, %v3856_v35 }
 0x24c   : > { %3272 = vmatprep.subr.bf16.mxu1 %v3856_v35 }
 0x24e   : > { %3257 = vmatmul.mubr.msk.bf16.vlgmr.msra.gmra.mxu0 %vm506_vm2, %v4148_v43 }
 0x24f   : > { %3267 = vmatpush3.bf16.xpose.msra.mxu0 %v1099_v9  ;;  %3268 = vmatprep.mubr.msk.bf16.mxu0 %vm3858_vm1, %v3856_v35 }
 0x250   : > { %3278 = vmatprep.subr.bf16.mxu0 %v3856_v35 }
 0x252   : > { %3263 = vmatmul.mubr.msk.bf16.vlgmr.msra.gmra.mxu1 %vm506_vm2, %v4146_v42 }
 0x253   : > { %3273 = vmatpush3.bf16.xpose.msra.mxu1 %v1148_v11  ;;  %3274 = vmatprep.mubr.msk.bf16.mxu1 %vm3858_vm1, %v3856_v35 }
 0x254   : > { %3284 = vmatprep.subr.bf16.mxu1 %v3856_v35 }
 0x256   : > { %3269 = vmatmul.mubr.msk.bf16.vlgmr.msra.gmra.mxu0 %vm506_vm2, %v4156_v45 }
 0x257   : > { %3279 = vmatpush3.bf16.xpose.msra.mxu0 %v1197_v13  ;;  %3280 = vmatprep.mubr.msk.bf16.mxu0 %vm3858_vm1, %v3856_v35 }
 0x258   : > { %3290 = vmatprep.subr.bf16.mxu0 %v3856_v35 }
 0x25a   : > { %3275 = vmatmul.mubr.msk.bf16.vlgmr.msra.gmra.mxu1 %vm506_vm2, %v4154_v44 }
 0x25b   : > { %3285 = vmatpush3.bf16.xpose.msra.mxu1 %v1246_v15  ;;  %3286 = vmatprep.mubr.msk.bf16.mxu1 %vm3858_vm1, %v3856_v35 }
 0x25c   : > { %3296 = vmatprep.subr.bf16.mxu1 %v3856_v35 }
 0x25e   : > { %3281 = vmatmul.mubr.msk.bf16.vlgmr.msra.gmra.mxu0 %vm506_vm2, %v4162_v46 }
 0x25f   : > { %3291 = vmatpush3.bf16.msra.mxu0 %v1739_v16  ;;  %3292 = vmatprep.mubr.msk.bf16.mxu0 %vm3858_vm1, %v3856_v35  ;;  %v1292_v16 = vld [vmem:[#allocation9 + $0x18] sm:$0xff] }
 0x260   : > { %3302 = vmatprep.subr.bf16.mxu0 %v3856_v35 }
 0x262   : > { %3287 = vmatmul.mubr.msk.bf16.vlgmr.msra.gmra.mxu1 %vm506_vm2, %v4170_v49 }
 0x263   : > { %3297 = vmatpush3.bf16.msra.mxu1 %v1786_v17  ;;  %3298 = vmatprep.mubr.msk.bf16.mxu1 %vm3858_vm1, %v3856_v35 }
 0x264   : > { %3308 = vmatprep.subr.bf16.mxu1 %v3856_v35 }
 0x297   : > { %v547_v19 = vpop.f32.mrf.mxu1 }
 0x298   : > { %v1297_v21 = vadd.f32 %v1289_v18, %v547_v19 }
 0x299   : > { %v3198_v22 = vpop.f32.mrf.mxu1 }
 0x29a   : > { %v4297_v23 = vadd.f32 %v4294_v20, %v1297_v21 }
 0x29b   : > { %v550_v24 = vpop.f32.mrf.mxu1 }
 0x29c   : > { %v1370_v25 = vsel %vm1369_vm3, %v4297_v23, -inf  ;;  %v1298_v29 = vadd.f32 %v1290_v26, %v550_v24 }
 0x29d   : > { %1371 = vmax.xlane.f32.xlu0 %v1370_v25  ;;  %v3199_v27 = vpop.f32.mrf.mxu1 }
 0x29e   : > { %v4309_v40 = vadd.f32 %v4303_v34, %v1298_v29 }
 0x29f   : > { %v596_v28 = vpop.f32.mrf.mxu1 }
 0x2a0   : > { %v645_v30 = vpop.f32.mrf.mxu0  ;;  %v1299_v42 = vadd.f32 %v1289_v18, %v596_v28  ;;  %v1373_v54 = vsel %vm1369_vm3, %v4309_v40, -inf }
 0x2a1   : > { %v1301_v32 = vadd.f32 %v1289_v18, %v645_v30  ;;  %v3204_v33 = vpop.f32.mrf.mxu1 }
 0x2a2   : > { %v3210_v36 = vpop.f32.mrf.mxu0  ;;  %v4327_v59 = vadd.f32 %v4315_v51, %v1299_v42 }
 0x2a3   : > { %v599_v37 = vpop.f32.mrf.mxu1  ;;  %v4306_v38 = vadd.f32 %v4301_v31, %v1301_v32 }
 0x2a4   : > { %v648_v39 = vpop.f32.mrf.mxu0  ;;  %v1300_v56 = vadd.f32 %v1290_v26, %v599_v37  ;;  %v1376_v2 = vsel %vm1369_vm3, %v4327_v59, -inf }
 0x2a5   : > { %v1302_v43 = vadd.f32 %v1290_v26, %v648_v39  ;;  %v3205_v47 = vpop.f32.mrf.mxu1  ;;  %v1382_v48 = vsel %vm1369_vm3, %v4306_v38, -inf }
 0x2a6   : > { %1383 = vmax.xlane.f32.xlu1 %v1382_v48  ;;  %v3211_v50 = vpop.f32.mrf.mxu0  ;;  %v4339_v3 = vadd.f32 %v4329_v61, %v1300_v56 }
 0x2a7   : > { %v4318_v52 = vadd.f32 %v4311_v41, %v1302_v43 }
 0x2a8   : > { %v694_v53 = vpop.f32.mrf.mxu1  ;;  %v1379_v6 = vsel %vm1369_vm3, %v4339_v3, -inf }
 0x2a9   : > { %v1303_v57 = vadd.f32 %v1289_v18, %v694_v53  ;;  %v1385_v58 = vsel %vm1369_vm3, %v4318_v52, -inf }
 0x2aa   : > { %v3216_v60 = vpop.f32.mrf.mxu1  ;;  %1374 = vmax.xlane.f32.xlu1 %v1373_v54  ;;  %1386 = vmax.xlane.f32.xlu0 %v1385_v58 }
 0x2ab   : > { %v4332_v62 = vadd.f32 %v4322_v55, %v1303_v57 }
 0x2ac   : > { %v697_v63 = vpop.f32.mrf.mxu1 }
 0x2ad   : > { %v1304_v0 = vadd.f32 %v1290_v26, %v697_v63  ;;  %v1388_v1 = vsel %vm1369_vm3, %v4332_v62, -inf }
 0x2ae   : > { %v3217_v4 = vpop.f32.mrf.mxu1  ;;  %1389 = vmax.xlane.f32.xlu1 %v1388_v1  ;;  %1377 = vmax.xlane.f32.xlu0 %v1376_v2 }
 0x2af   : > { %v4346_v7 = vadd.f32 %v4341_v5, %v1304_v0  ;;  %v1293_v0 = vld [vmem:[#allocation9 + $0x20] sm:$0xff] }
 0x2b1   : > { %v1391_v8 = vsel %vm1369_vm3, %v4346_v7, -inf }
 0x2b2   : > { %1380 = vmax.xlane.f32.xlu0 %v1379_v6 }
 0x2b6   : > { %1392 = vmax.xlane.f32.xlu0 %v1391_v8 }
 0x2f6   : > { %v743_v9 = vpop.f32.mrf.mxu0 }
 0x2f7   : > { %v1305_v12 = vadd.f32 %v1291_v10, %v743_v9 }
 0x2f8   : > { %v3222_v11 = vpop.f32.mrf.mxu0 }
 0x2f9   : > { %v4354_v24 = vadd.f32 %v4294_v20, %v1305_v12 }
 0x2fa   : > { %v746_v13 = vpop.f32.mrf.mxu0  ;;  %v792_v14 = vpop.f32.mrf.mxu1 }
 0x2fb   : > { %v1307_v15 = vadd.f32 %v1291_v10, %v792_v14  ;;  %v1306_v25 = vadd.f32 %v1292_v16, %v746_v13  ;;  %v1394_v36 = vsel %vm1369_vm3, %v4354_v24, -inf  ;;  %v1294_v14 = vld [vmem:[#allocation9 + $0x28] sm:$0xff] }
 0x2fc   : > { %v3223_v17 = vpop.f32.mrf.mxu0  ;;  %v3228_v18 = vpop.f32.mrf.mxu1 }
 0x2fd   : > { %v4351_v19 = vadd.f32 %v4315_v51, %v1307_v15  ;;  %v4366_v43 = vadd.f32 %v4303_v34, %v1306_v25  ;;  %v4388_v17 = vpop.permute.xlu1 %1832 }
 0x2fe   : > { %v795_v21 = vpop.f32.mrf.mxu1  ;;  %v841_v22 = vpop.f32.mrf.mxu0 }
 0x2ff   : > { %v1308_v26 = vadd.f32 %v1292_v16, %v795_v21  ;;  %v1400_v27 = vsel %vm1369_vm3, %v4351_v19, -inf  ;;  %v1309_v37 = vadd.f32 %v1291_v10, %v841_v22  ;;  %v1397_v60 = vsel %vm1369_vm3, %v4366_v43, -inf }
 0x300   : > { %v3229_v28 = vpop.f32.mrf.mxu1  ;;  %1401 = vmax.xlane.f32.xlu1 %v1400_v27  ;;  %v3234_v29 = vpop.f32.mrf.mxu0 }
 0x301   : > { %v4359_v30 = vadd.f32 %v4329_v61, %v1308_v26  ;;  %v4376_v63 = vadd.f32 %v4301_v31, %v1309_v37  ;;  %v4395_v26 = vpop.permute.xlu0 %1879 }
 0x302   : > { %v844_v32 = vpop.f32.mrf.mxu0  ;;  %v890_v33 = vpop.f32.mrf.mxu1 }
 0x303   : > { %v1311_v39 = vadd.f32 %v1291_v10, %v890_v33  ;;  %v1403_v42 = vsel %vm1369_vm3, %v4359_v30, -inf  ;;  %v1310_v53 = vadd.f32 %v1292_v16, %v844_v32  ;;  %v1406_v13 = vsel %vm1369_vm3, %v4376_v63, -inf }
 0x304   : > { %v3240_v47 = vpop.f32.mrf.mxu1  ;;  %1404 = vmax.xlane.f32.xlu0 %v1403_v42  ;;  %1395 = vmax.xlane.f32.xlu1 %v1394_v36  ;;  %v3235_v48 = vpop.f32.mrf.mxu0 }
 0x305   : > { %v4369_v50 = vadd.f32 %v4322_v55, %v1311_v39  ;;  %v4382_v9 = vadd.f32 %v4311_v41, %v1310_v53  ;;  %v4405_v48 = vpop.permute.xlu1 %2255 }
 0x306   : > { %v893_v54 = vpop.f32.mrf.mxu1  ;;  %v939_v56 = vpop.f32.mrf.mxu0 }
 0x307   : > { %v1312_v57 = vadd.f32 %v1292_v16, %v893_v54  ;;  %v1412_v58 = vsel %vm1369_vm3, %v4369_v50, -inf  ;;  %v1313_v10 = vadd.f32 %v1293_v0, %v939_v56  ;;  %v1409_v25 = vsel %vm1369_vm3, %v4382_v9, -inf }
 0x308   : > { %v3241_v1 = vpop.f32.mrf.mxu1  ;;  %1413 = vmax.xlane.f32.xlu1 %v1412_v58  ;;  %1398 = vmax.xlane.f32.xlu0 %v1397_v60  ;;  %v3246_v2 = vpop.f32.mrf.mxu0 }
 0x309   : > { %v4379_v4 = vadd.f32 %v4341_v5, %v1312_v57  ;;  %v4400_v32 = vadd.f32 %v4294_v20, %v1313_v10  ;;  %v4414_v1 = vpop.permute.xlu0 %1973 }
 0x30a   : > { %v942_v6 = vpop.f32.mrf.mxu0  ;;  %v988_v8 = vpop.f32.mrf.mxu1 }
 0x30b   : > { %v1315_v11 = vadd.f32 %v1293_v0, %v988_v8  ;;  %v1415_v12 = vsel %vm1369_vm3, %v4379_v4, -inf  ;;  %v1314_v27 = vadd.f32 %v1294_v14, %v942_v6  ;;  %v1418_v56 = vsel %vm1369_vm3, %v4400_v32, -inf }
 0x30c   : > { %v3252_v15 = vpop.f32.mrf.mxu1  ;;  %1416 = vmax.xlane.f32.xlu0 %v1415_v12  ;;  %1407 = vmax.xlane.f32.xlu1 %v1406_v13  ;;  %v3247_v16 = vpop.f32.mrf.mxu0 }
 0x30d   : > { %v4391_v18 = vadd.f32 %v4315_v51, %v1315_v11  ;;  %v4412_v57 = vadd.f32 %v4303_v34, %v1314_v27  ;;  %v1295_v15 = vld [vmem:[#allocation9 + $0x30] sm:$0xff] }
 0x30e   : > { %v991_v21 = vpop.f32.mrf.mxu1  ;;  %v1037_v22 = vpop.f32.mrf.mxu0 }
 0x30f   : > { %v1316_v28 = vadd.f32 %v1294_v14, %v991_v21  ;;  %v1424_v29 = vsel %vm1369_vm3, %v4391_v18, -inf  ;;  %v1317_v39 = vadd.f32 %v1293_v0, %v1037_v22  ;;  %v1421_v13 = vsel %vm1369_vm3, %v4412_v57, -inf  ;;  %v4426_v22 = vpop.permute.xlu1 %1926 }
 0x310   : > { %v3253_v33 = vpop.f32.mrf.mxu1  ;;  %1425 = vmax.xlane.f32.xlu1 %v1424_v29  ;;  %1410 = vmax.xlane.f32.xlu0 %v1409_v25  ;;  %v3258_v36 = vpop.f32.mrf.mxu0 }
 0x311   : > { %v4403_v37 = vadd.f32 %v4329_v61, %v1316_v28  ;;  %v4420_v8 = vadd.f32 %v4301_v31, %v1317_v39  ;;  %v4433_v29 = vpop.permute.xlu0 %2067  ;;  %v1296_v36 = vld [vmem:[#allocation9 + $0x38] sm:$0xff] }
 0x312   : > { %v1040_v42 = vpop.f32.mrf.mxu0  ;;  %v1086_v47 = vpop.f32.mrf.mxu1 }
 0x313   : > { %v1319_v53 = vadd.f32 %v1293_v0, %v1086_v47  ;;  %v1427_v54 = vsel %vm1369_vm3, %v4403_v37, -inf  ;;  %v1318_v10 = vadd.f32 %v1294_v14, %v1040_v42 }
 0x314   : > { %v3264_v58 = vpop.f32.mrf.mxu1  ;;  %1428 = vmax.xlane.f32.xlu0 %v1427_v54  ;;  %1419 = vmax.xlane.f32.xlu1 %v1418_v56  ;;  %v3259_v60 = vpop.f32.mrf.mxu0 }
 0x315   : > { %v4417_v2 = vadd.f32 %v4322_v55, %v1319_v53  ;;  %v4438_v47 = vadd.f32 %v4311_v41, %v1318_v10 }
 0x316   : > { %v1089_v6 = vpop.f32.mrf.mxu1  ;;  %v1135_v0 = vpop.f32.mrf.mxu0 }
 0x317   : > { %v1320_v11 = vadd.f32 %v1294_v14, %v1089_v6  ;;  %v1436_v12 = vsel %vm1369_vm3, %v4417_v2, -inf  ;;  %v1430_v14 = vsel %vm1369_vm3, %v4420_v8, -inf  ;;  %v1321_v33 = vadd.f32 %v1295_v15, %v1135_v0 }
 0x318   : > { %v3265_v16 = vpop.f32.mrf.mxu1  ;;  %1437 = vmax.xlane.f32.xlu1 %v1436_v12  ;;  %1422 = vmax.xlane.f32.xlu0 %v1421_v13  ;;  %v3270_v21 = vpop.f32.mrf.mxu0  ;;  %v1433_v10 = vsel %vm1369_vm3, %v4438_v47, -inf }
 0x319   : > { %v4429_v25 = vadd.f32 %v4341_v5, %v1320_v11  ;;  %v4443_v11 = vpop.permute.xlu1 %2020  ;;  %v4450_v13 = vadd.f32 %v4294_v20, %v1321_v33  ;;  %v4452_v21 = vpop.permute.xlu0 %2161 }
 0x31a   : > { %v1138_v27 = vpop.f32.mrf.mxu0  ;;  %v1184_v28 = vpop.f32.mrf.mxu1 }
 0x31b   : > { %v1323_v39 = vadd.f32 %v1295_v15, %v1184_v28  ;;  %v1439_v42 = vsel %vm1369_vm3, %v4429_v25, -inf  ;;  %v1322_v58 = vadd.f32 %v1296_v36, %v1138_v27  ;;  %v1442_v33 = vsel %vm1369_vm3, %v4450_v13, -inf }
 0x31c   : > { %v3276_v53 = vpop.f32.mrf.mxu1  ;;  %1440 = vmax.xlane.f32.xlu0 %v1439_v42  ;;  %1431 = vmax.xlane.f32.xlu1 %v1430_v14  ;;  %v3271_v54 = vpop.f32.mrf.mxu0 }
 0x31d   : > { %v4441_v56 = vadd.f32 %v4315_v51, %v1323_v39  ;;  %v4458_v42 = vadd.f32 %v4303_v34, %v1322_v58 }
 0x31e   : > { %v1187_v60 = vpop.f32.mrf.mxu1  ;;  %v1233_v6 = vpop.f32.mrf.mxu0 }
 0x31f   : > { %v1324_v0 = vadd.f32 %v1296_v36, %v1187_v60  ;;  %v1448_v12 = vsel %vm1369_vm3, %v4441_v56, -inf  ;;  %v1325_v28 = vadd.f32 %v1295_v15, %v1233_v6  ;;  %v1445_v34 = vsel %vm1369_vm3, %v4458_v42, -inf }
 0x320   : > { %v3277_v16 = vpop.f32.mrf.mxu1  ;;  %1449 = vmax.xlane.f32.xlu1 %v1448_v12  ;;  %1434 = vmax.xlane.f32.xlu0 %v1433_v10  ;;  %v3282_v51 = vpop.f32.mrf.mxu0 }
 0x321   : > { %v4455_v27 = vadd.f32 %v4329_v61, %v1324_v0  ;;  %v4464_v12 = vpop.permute.xlu1 %2114 }
 0x322   : > { %v1236_v14 = vpop.f32.mrf.mxu0  ;;  %v1282_v39 = vpop.f32.mrf.mxu1 }
 0x323   : > { %v1327_v53 = vadd.f32 %v1295_v15, %v1282_v39  ;;  %v1451_v20 = vsel %vm1369_vm3, %v4455_v27, -inf  ;;  %v4472_v15 = vadd.f32 %v4301_v31, %v1325_v28  ;;  %v1326_v58 = vadd.f32 %v1296_v36, %v1236_v14 }
 0x324   : > { %v3288_v54 = vpop.f32.mrf.mxu1  ;;  %1452 = vmax.xlane.f32.xlu0 %v1451_v20  ;;  %1443 = vmax.xlane.f32.xlu1 %v1442_v33  ;;  %v3283_v60 = vpop.f32.mrf.mxu0 }
 0x325   : > { %v4467_v61 = vadd.f32 %v4322_v55, %v1327_v53  ;;  %v4480_v20 = vpop.permute.xlu1 %2208 }
 0x326   : > { %v1285_v6 = vpop.f32.mrf.mxu1  ;;  %v1372_v0 = vpop.xlane.xlu0 %1371 }
 0x327   : > { %v1328_v10 = vadd.f32 %v1296_v36, %v1285_v6  ;;  %v1466_v16 = vsub.f32 %v4297_v23, %v1372_v0  ;;  %v1460_v51 = vsel %vm1369_vm3, %v4467_v61, -inf  ;;  %v1454_v36 = vsel %vm1369_vm3, %v4472_v15, -inf }
 0x328   : > { %v3289_v39 = vpop.f32.mrf.mxu1  ;;  %1461 = vmax.xlane.f32.xlu1 %v1460_v51  ;;  %1446 = vmax.xlane.f32.xlu0 %v1445_v34  ;;  %v4487_v23 = vadd.f32 %v4311_v41, %v1326_v58 }
 0x329   : > { %v1498_v55 = vmul.f32 1.442695, %v1466_v16  ;;  %v4478_v53 = vadd.f32 %v4341_v5, %v1328_v10 }
 0x32a   : > { %v1457_v14 = vsel %vm1369_vm3, %v4487_v23, -inf }
 0x32b   : > { %3512 = vpow2.f32 %v1498_v55  ;;  %v1463_v31 = vsel %vm1369_vm3, %v4478_v53, -inf }
 0x32c   : > { %1464 = vmax.xlane.f32.xlu0 %v1463_v31  ;;  %1455 = vmax.xlane.f32.xlu1 %v1454_v36 }
 0x32f   : > { %v1384_v28 = vpop.xlane.xlu1 %1383 }
 0x330   : > { %v1470_v5 = vsub.f32 %v4306_v38, %v1384_v28  ;;  %1458 = vmax.xlane.f32.xlu0 %v1457_v14 }
 0x332   : > { %v1506_v33 = vmul.f32 1.442695, %v1470_v5 }
 0x333   : > { %v1387_v0 = vpop.xlane.xlu0 %1386  ;;  %v1375_v38 = vpop.xlane.xlu1 %1374 }
 0x334   : > { %3514 = vpow2.f32 %v1506_v33  ;;  %v1467_v58 = vsub.f32 %v4309_v40, %v1375_v38  ;;  %v1471_v51 = vsub.f32 %v4318_v52, %v1387_v0 }
 0x336   : > { %v1500_v16 = vmul.f32 1.442695, %v1467_v58  ;;  %v1508_v39 = vmul.f32 1.442695, %v1471_v51 }
 0x337   : > { %v1378_v34 = vpop.xlane.xlu0 %1377  ;;  %v1390_v14 = vpop.xlane.xlu1 %1389 }
 0x338   : > { %v4492_v54 = vpop.eup %3512  ;;  %3516 = vpow2.f32 %v1500_v16  ;;  %v1468_v40 = vsub.f32 %v4327_v59, %v1378_v34  ;;  %v1472_v52 = vsub.f32 %v4332_v62, %v1390_v14 }
 0x339   : > { %v1562_v60 = vsel %vm1369_vm3, %v4492_v54, 0.0  ;;  %3518 = vpow2.f32 %v1508_v39 }
 0x33a   : > { %1563 = vadd.xlane.f32.xlu1 %v1562_v60  ;;  %v1502_v33 = vmul.f32 1.442695, %v1468_v40  ;;  %v1510_v60 = vmul.f32 1.442695, %v1472_v52 }
 0x33b   : > { %v1381_v10 = vpop.xlane.xlu0 %1380 }
 0x33c   : > { %v1469_v55 = vsub.f32 %v4339_v3, %v1381_v10 }
 0x33e   : > { %v1504_v36 = vmul.f32 1.442695, %v1469_v55 }
 0x33f   : > { %v1393_v31 = vpop.xlane.xlu0 %1392 }
 0x340   : > { %3520 = vpow2.f32 %v1504_v36 }
 0x341   : > { %v4496_v6 = vpop.eup %3514 }
 0x342   : > { %v1574_v41 = vsel %vm1369_vm3, %v4496_v6, 0.0 }
 0x343   : > { %1575 = vadd.xlane.f32.xlu1 %v1574_v41 }
 0x345   : > { %v4509_v5 = vpop.eup %3516 }
 0x346   : > { %2302 = vrot.lane.b32.xlu0 %v4156_v45, %s3861_s23  ;;  %v1473_v45 = vsub.f32 %v4346_v7, %v1393_v31  ;;  %v1565_v3 = vsel %vm1369_vm3, %v4509_v5, 0.0 }
 0x348   : > { %v1512_v28 = vmul.f32 1.442695, %v1473_v45 }
 0x34a   : > { %3522 = vpow2.f32 %v1512_v28 }
 0x34b   : > { %3524 = vpow2.f32 %v1502_v33 }
 0x34c   : > { %3526 = vpow2.f32 %v1510_v60 }
 0x354   : > { %2349 = vrot.lane.b32.xlu1 %v4154_v44, %s3861_s23  ;;  %v4514_v44 = vpop.eup %3518 }
 0x355   : > { %v1577_v7 = vsel %vm1369_vm3, %v4514_v44, 0.0  ;;  %v4518_v41 = vpop.eup %3520 }
 0x356   : > { %v1571_v59 = vsel %vm1369_vm3, %v4518_v41, 0.0 }
 0x357   : > { %v4522_v62 = vpop.eup %3522 }
 0x358   : > { %v1583_v0 = vsel %vm1369_vm3, %v4522_v62, 0.0  ;;  %v4526_v38 = vpop.eup %3524 }
 0x359   : > { %v1568_v34 = vsel %vm1369_vm3, %v4526_v38, 0.0  ;;  %v4530_v58 = vpop.eup %3526 }
 0x35a   : > { %v1580_v10 = vsel %vm1369_vm3, %v4530_v58, 0.0 }
 0x365   : > { %1566 = vadd.xlane.f32.xlu0 %v1565_v3 }
 0x369   : > { %1578 = vadd.xlane.f32.xlu0 %v1577_v7 }
 0x36d   : > { %1572 = vadd.xlane.f32.xlu0 %v1571_v59 }
 0x371   : > { %1584 = vadd.xlane.f32.xlu0 %v1583_v0 }
 0x378   : > { %1569 = vadd.xlane.f32.xlu1 %v1568_v34 }
 0x37c   : > { %1581 = vadd.xlane.f32.xlu1 %v1580_v10 }
 0x389   : > { %v1402_v16 = vpop.xlane.xlu1 %1401 }
 0x38a   : > { %v1476_v51 = vsub.f32 %v4351_v19, %v1402_v16 }
 0x38c   : > { %v1518_v39 = vmul.f32 1.442695, %v1476_v51 }
 0x38d   : > { %v1396_v55 = vpop.xlane.xlu1 %1395  ;;  %v1405_v31 = vpop.xlane.xlu0 %1404 }
 0x38e   : > { %3528 = vpow2.f32 %v1518_v39  ;;  %v1474_v36 = vsub.f32 %v4354_v24, %v1396_v55  ;;  %v1477_v45 = vsub.f32 %v4359_v30, %v1405_v31 }
 0x390   : > { %v1514_v28 = vmul.f32 1.442695, %v1474_v36  ;;  %v1520_v40 = vmul.f32 1.442695, %v1477_v45 }
 0x391   : > { %v1414_v14 = vpop.xlane.xlu1 %1413  ;;  %v1399_v52 = vpop.xlane.xlu0 %1398 }
 0x392   : > { %3530 = vpow2.f32 %v1514_v28  ;;  %v1480_v33 = vsub.f32 %v4369_v50, %v1414_v14  ;;  %v1475_v3 = vsub.f32 %v4366_v43, %v1399_v52 }
 0x393   : > { %3532 = vpow2.f32 %v1520_v40 }
 0x394   : > { %v1526_v60 = vmul.f32 1.442695, %v1480_v33  ;;  %v1516_v19 = vmul.f32 1.442695, %v1475_v3 }
 0x395   : > { %v1408_v7 = vpop.xlane.xlu1 %1407  ;;  %v1417_v59 = vpop.xlane.xlu0 %1416 }
 0x396   : > { %3534 = vpow2.f32 %v1526_v60  ;;  %v1478_v0 = vsub.f32 %v4376_v63, %v1408_v7  ;;  %v1481_v24 = vsub.f32 %v4379_v4, %v1417_v59 }
 0x397   : > { %3536 = vpow2.f32 %v1516_v19 }
 0x398   : > { %v1522_v30 = vmul.f32 1.442695, %v1478_v0  ;;  %v1528_v34 = vmul.f32 1.442695, %v1481_v24 }
 0x399   : > { %v1426_v10 = vpop.xlane.xlu1 %1425  ;;  %v1411_v16 = vpop.xlane.xlu0 %1410 }
 0x39a   : > { %3538 = vpow2.f32 %v1522_v30  ;;  %v1484_v50 = vsub.f32 %v4391_v18, %v1426_v10  ;;  %v1479_v43 = vsub.f32 %v4382_v9, %v1411_v16 }
 0x39b   : > { %v4543_v51 = vpop.eup %3528  ;;  %3540 = vpow2.f32 %v1528_v34 }
 0x39c   : > { %v1534_v39 = vmul.f32 1.442695, %v1484_v50  ;;  %v1524_v55 = vmul.f32 1.442695, %v1479_v43  ;;  %v1592_v63 = vsel %vm1369_vm3, %v4543_v51, 0.0 }
 0x39d   : > { %v1420_v31 = vpop.xlane.xlu1 %1419  ;;  %1593 = vadd.xlane.f32.xlu1 %v1592_v63  ;;  %v1429_v4 = vpop.xlane.xlu0 %1428 }
 0x39e   : > { %3542 = vpow2.f32 %v1534_v39  ;;  %v1482_v36 = vsub.f32 %v4400_v32, %v1420_v31  ;;  %v1485_v45 = vsub.f32 %v4403_v37, %v1429_v4 }
 0x39f   : > { %v4549_v28 = vpop.eup %3530  ;;  %3544 = vpow2.f32 %v1524_v55 }
 0x3a0   : > { %v4551_v9 = vpop.eup %3532  ;;  %v1530_v18 = vmul.f32 1.442695, %v1482_v36  ;;  %v1536_v40 = vmul.f32 1.442695, %v1485_v45  ;;  %v1586_v14 = vsel %vm1369_vm3, %v4549_v28, 0.0 }
 0x3a1   : > { %v1438_v52 = vpop.xlane.xlu1 %1437  ;;  %1587 = vadd.xlane.f32.xlu1 %v1586_v14  ;;  %v1595_v33 = vsel %vm1369_vm3, %v4551_v9, 0.0  ;;  %v1423_v3 = vpop.xlane.xlu0 %1422 }
 0x3a2   : > { %3546 = vpow2.f32 %v1530_v18  ;;  %v1488_v32 = vsub.f32 %v4417_v2, %v1438_v52  ;;  %1596 = vadd.xlane.f32.xlu0 %v1595_v33  ;;  %v1483_v37 = vsub.f32 %v4412_v57, %v1423_v3 }
 0x3a3   : > { %v4559_v60 = vpop.eup %3534  ;;  %3548 = vpow2.f32 %v1536_v40 }
 0x3a4   : > { %v4561_v19 = vpop.eup %3536  ;;  %v1542_v7 = vmul.f32 1.442695, %v1488_v32  ;;  %v1532_v59 = vmul.f32 1.442695, %v1483_v37  ;;  %v1604_v0 = vsel %vm1369_vm3, %v4559_v60, 0.0 }
 0x3a5   : > { %v1432_v24 = vpop.xlane.xlu1 %1431  ;;  %1605 = vadd.xlane.f32.xlu1 %v1604_v0  ;;  %v1589_v30 = vsel %vm1369_vm3, %v4561_v19, 0.0  ;;  %v1441_v34 = vpop.xlane.xlu0 %1440 }
 0x3a6   : > { %3550 = vpow2.f32 %v1542_v7  ;;  %v1486_v2 = vsub.f32 %v4420_v8, %v1432_v24  ;;  %1590 = vadd.xlane.f32.xlu0 %v1589_v30  ;;  %v1489_v57 = vsub.f32 %v4429_v25, %v1441_v34 }
 0x3a7   : > { %v4569_v10 = vpop.eup %3538  ;;  %3552 = vpow2.f32 %v1532_v59 }
 0x3a8   : > { %v4571_v16 = vpop.eup %3540  ;;  %v1538_v50 = vmul.f32 1.442695, %v1486_v2  ;;  %v1544_v43 = vmul.f32 1.442695, %v1489_v57  ;;  %v1598_v39 = vsel %vm1369_vm3, %v4569_v10, 0.0 }
 0x3a9   : > { %v1450_v55 = vpop.xlane.xlu1 %1449  ;;  %1599 = vadd.xlane.f32.xlu1 %v1598_v39  ;;  %v1607_v63 = vsel %vm1369_vm3, %v4571_v16, 0.0  ;;  %v1435_v31 = vpop.xlane.xlu0 %1434 }
 0x3aa   : > { %3554 = vpow2.f32 %v1538_v50  ;;  %v1492_v8 = vsub.f32 %v4441_v56, %v1450_v55  ;;  %1608 = vadd.xlane.f32.xlu0 %v1607_v63  ;;  %v1487_v25 = vsub.f32 %v4438_v47, %v1435_v31 }
 0x3ab   : > { %v4579_v4 = vpop.eup %3542  ;;  %3556 = vpow2.f32 %v1544_v43 }
 0x3ac   : > { %v4581_v36 = vpop.eup %3544  ;;  %v1550_v45 = vmul.f32 1.442695, %v1492_v8  ;;  %v1540_v18 = vmul.f32 1.442695, %v1487_v25  ;;  %v1616_v40 = vsel %vm1369_vm3, %v4579_v4, 0.0 }
 0x3ad   : > { %v1444_v14 = vpop.xlane.xlu1 %1443  ;;  %1617 = vadd.xlane.f32.xlu1 %v1616_v40  ;;  %v1601_v52 = vsel %vm1369_vm3, %v4581_v36, 0.0  ;;  %v1453_v33 = vpop.xlane.xlu0 %1452 }
 0x3ae   : > { %3558 = vpow2.f32 %v1550_v45  ;;  %v1490_v56 = vsub.f32 %v4450_v13, %v1444_v14  ;;  %1602 = vadd.xlane.f32.xlu0 %v1601_v52  ;;  %v1493_v47 = vsub.f32 %v4455_v27, %v1453_v33 }
 0x3af   : > { %v4589_v3 = vpop.eup %3546  ;;  %3560 = vpow2.f32 %v1540_v18 }
 0x3b0   : > { %v4591_v32 = vpop.eup %3548  ;;  %v1546_v37 = vmul.f32 1.442695, %v1490_v56  ;;  %v1552_v7 = vmul.f32 1.442695, %v1493_v47  ;;  %v1610_v59 = vsel %vm1369_vm3, %v4589_v3, 0.0 }
 0x3b1   : > { %v1462_v0 = vpop.xlane.xlu1 %1461  ;;  %1611 = vadd.xlane.f32.xlu1 %v1610_v59  ;;  %v1619_v24 = vsel %vm1369_vm3, %v4591_v32, 0.0  ;;  %v1447_v30 = vpop.xlane.xlu0 %1446 }
 0x3b2   : > { %3562 = vpow2.f32 %v1546_v37  ;;  %v1496_v13 = vsub.f32 %v4467_v61, %v1462_v0  ;;  %1620 = vadd.xlane.f32.xlu0 %v1619_v24  ;;  %v1491_v27 = vsub.f32 %v4458_v42, %v1447_v30 }
 0x3b3   : > { %v4599_v34 = vpop.eup %3550  ;;  %3564 = vpow2.f32 %v1552_v7 }
 0x3b4   : > { %v4601_v2 = vpop.eup %3552  ;;  %v1558_v57 = vmul.f32 1.442695, %v1496_v13  ;;  %v1548_v50 = vmul.f32 1.442695, %v1491_v27  ;;  %v1628_v43 = vsel %vm1369_vm3, %v4599_v34, 0.0 }
 0x3b5   : > { %v1456_v39 = vpop.xlane.xlu1 %1455  ;;  %1629 = vadd.xlane.f32.xlu1 %v1628_v43  ;;  %v1613_v55 = vsel %vm1369_vm3, %v4601_v2, 0.0  ;;  %v1465_v63 = vpop.xlane.xlu0 %1464 }
 0x3b6   : > { %3566 = vpow2.f32 %v1558_v57  ;;  %v1494_v61 = vsub.f32 %v4472_v15, %v1456_v39  ;;  %1614 = vadd.xlane.f32.xlu0 %v1613_v55  ;;  %v1497_v42 = vsub.f32 %v4478_v53, %v1465_v63 }
 0x3b7   : > { %v4609_v31 = vpop.eup %3554  ;;  %3568 = vpow2.f32 %v1548_v50 }
 0x3b8   : > { %v4611_v8 = vpop.eup %3556  ;;  %v1554_v25 = vmul.f32 1.442695, %v1494_v61  ;;  %v1560_v45 = vmul.f32 1.442695, %v1497_v42  ;;  %v1622_v18 = vsel %vm1369_vm3, %v4609_v31, 0.0 }
 0x3b9   : > { %1623 = vadd.xlane.f32.xlu1 %v1622_v18  ;;  %v1631_v40 = vsel %vm1369_vm3, %v4611_v8, 0.0  ;;  %v1459_v14 = vpop.xlane.xlu0 %1458 }
 0x3ba   : > { %3570 = vpow2.f32 %v1554_v25  ;;  %1632 = vadd.xlane.f32.xlu0 %v1631_v40  ;;  %v1495_v15 = vsub.f32 %v4487_v23, %v1459_v14 }
 0x3bb   : > { %v4618_v53 = vpop.eup %3558  ;;  %3572 = vpow2.f32 %v1560_v45 }
 0x3bc   : > { %v4620_v52 = vpop.eup %3560  ;;  %v1556_v33 = vmul.f32 1.442695, %v1495_v15  ;;  %v1640_v56 = vsel %vm1369_vm3, %v4618_v53, 0.0 }
 0x3bd   : > { %1641 = vadd.xlane.f32.xlu1 %v1640_v56  ;;  %v1625_v47 = vsel %vm1369_vm3, %v4620_v52, 0.0  ;;  %v4658_v63 = vpop.permute.xlu0 %2302 }
 0x3be   : > { %3574 = vpow2.f32 %v1556_v33  ;;  %1626 = vadd.xlane.f32.xlu0 %v1625_v47 }
 0x3bf   : > { %v4626_v37 = vpop.eup %3562 }
 0x3c0   : > { %v4628_v7 = vpop.eup %3564  ;;  %v1634_v23 = vsel %vm1369_vm3, %v4626_v37, 0.0 }
 0x3c1   : > { %1635 = vadd.xlane.f32.xlu1 %v1634_v23  ;;  %v1643_v59 = vsel %vm1369_vm3, %v4628_v7, 0.0 }
 0x3c2   : > { %1644 = vadd.xlane.f32.xlu0 %v1643_v59 }
 0x3c3   : > { %v4634_v0 = vpop.eup %3566  ;;  %v1564_v61 = vpop.xlane.xlu1 %1563 }
 0x3c4   : > { %v4636_v24 = vpop.eup %3568  ;;  %v1652_v30 = vsel %vm1369_vm3, %v4634_v0, 0.0  ;;  %3576 = vrcp.f32 %v1564_v61 }
 0x3c5   : > { %1653 = vadd.xlane.f32.xlu1 %v1652_v30  ;;  %v1637_v13 = vsel %vm1369_vm3, %v4636_v24, 0.0 }
 0x3c6   : > { %1638 = vadd.xlane.f32.xlu0 %v1637_v13 }
 0x3c7   : > { %v4642_v27 = vpop.eup %3570 }
 0x3c8   : > { %v4644_v57 = vpop.eup %3572  ;;  %v1646_v50 = vsel %vm1369_vm3, %v4642_v27, 0.0 }
 0x3c9   : > { %1647 = vadd.xlane.f32.xlu1 %v1646_v50  ;;  %v1655_v43 = vsel %vm1369_vm3, %v4644_v57, 0.0 }
 0x3ca   : > { %1656 = vadd.xlane.f32.xlu0 %v1655_v43 }
 0x3cb   : > { %v4650_v39 = vpop.eup %3574 }
 0x3cc   : > { %v1649_v55 = vsel %vm1369_vm3, %v4650_v39, 0.0  ;;  %v1576_v25 = vpop.xlane.xlu1 %1575 }
 0x3ce   : > { %1650 = vadd.xlane.f32.xlu0 %v1649_v55 }
 0x3d0   : > { %v4660_v14 = vpop.permute.xlu1 %2349 }
 0x3d1   : > { %v3577_v18 = vpop.eup %3576 }
 0x3da   : > { %2443 = vrot.lane.b32.xlu1 %v4170_v49, %s3861_s23  ;;  %v1690_v49 = vmul.f32 %v3577_v18, %v4492_v54 }
 0x3e4   : > { %2396 = vrot.lane.b32.xlu0 %v4162_v46, %s3861_s23  ;;  %s3776_s23 = sshll.u32 %s3865_s19, 4  ;;  %s3777_s23 = int_to_ptr.vmem [resolvable:$false] %s3776_s23 }
 0x3e5   : > { %p3779_p9 = scmp.lt.s32.totalorder %s4840_s30, %s3777_s23 }
 0x3ee   : > { %v1567_v42 = vpop.xlane.xlu0 %1566 }
 0x3ef   : > { %3578 = vrcp.f32 %v1567_v42 }
 0x3f2   : > { %v1579_v45 = vpop.xlane.xlu0 %1578 }
 0x3f3   : > { %3580 = vrcp.f32 %v1579_v45 }
 0x3f4   : > { %3582 = vrcp.f32 %v1576_v25 }
 0x3f6   : > { %v1573_v15 = vpop.xlane.xlu0 %1572 }
 0x3f7   : > { %3584 = vrcp.f32 %v1573_v15 }
 0x3fa   : > { %v1585_v54 = vpop.xlane.xlu0 %1584 }
 0x3fc   : > { %v3579_v40 = vpop.eup %3578 }
 0x3fd   : > { %v1691_v33 = vmul.f32 %v3579_v40, %v4509_v5 }
 0x3ff   : > { %v1722_v46 = vpack.c.bf16 %v1691_v33, %v1690_v49 }
 0x400   : > { %v3581_v56 = vpop.eup %3580 }
 0x401   : > { %v1570_v47 = vpop.xlane.xlu1 %1569  ;;  %3293 = vmatmul.mubr.msk.bf16.vlgmr.msra.gmra.mxu0 %vm1369_vm3, %v1722_v46  ;;  %v3583_v23 = vpop.eup %3582  ;;  %v1695_v59 = vmul.f32 %v3581_v56, %v4514_v44 }
 0x402   : > { %3586 = vrcp.f32 %v1570_v47  ;;  %3303 = vmatpush3.bf16.msra.mxu0 %v4388_v17  ;;  %3304 = vmatprep.mubr.msk.bf16.mxu0 %vm3858_vm1, %v3856_v35  ;;  %v1694_v5 = vmul.f32 %v3583_v23, %v4496_v6 }
 0x403   : > { %3314 = vmatprep.subr.bf16.mxu0 %v3856_v35 }
 0x404   : > { %v1724_v13 = vpack.c.bf16 %v1695_v59, %v1694_v5  ;;  %v3585_v17 = vpop.eup %3584 }
 0x405   : > { %v1582_v30 = vpop.xlane.xlu1 %1581  ;;  %v1693_v43 = vmul.f32 %v3585_v17, %v4518_v41 }
 0x406   : > { %3588 = vrcp.f32 %v1582_v30 }
 0x407   : > { %3590 = vrcp.f32 %v1585_v54 }
 0x409   : > { %3305 = vmatmul.mubr.msk.bf16.vlgmr.msra.gmra.mxu0 %vm1369_vm3, %v1724_v13 }
 0x40a   : > { %3315 = vmatpush3.bf16.msra.mxu0 %v4426_v22  ;;  %3316 = vmatprep.mubr.msk.bf16.mxu0 %vm3858_vm1, %v3856_v35 }
 0x40b   : > { %3326 = vmatprep.subr.bf16.mxu0 %v3856_v35 }
 0x40f   : > { %v3587_v50 = vpop.eup %3586 }
 0x410   : > { %v1692_v44 = vmul.f32 %v3587_v50, %v4526_v38 }
 0x412   : > { %v1723_v55 = vpack.c.bf16 %v1693_v43, %v1692_v44 }
 0x413   : > { %v3589_v6 = vpop.eup %3588 }
 0x414   : > { %3299 = vmatmul.mubr.msk.bf16.vlgmr.msra.gmra.mxu1 %vm1369_vm3, %v1723_v55  ;;  %v3591_v61 = vpop.eup %3590  ;;  %v1696_v22 = vmul.f32 %v3589_v6, %v4530_v58 }
 0x415   : > { %3309 = vmatpush3.bf16.msra.mxu1 %v4395_v26  ;;  %3310 = vmatprep.mubr.msk.bf16.mxu1 %vm3858_vm1, %v3856_v35  ;;  %v1697_v42 = vmul.f32 %v3591_v61, %v4522_v62 }
 0x416   : > { %3320 = vmatprep.subr.bf16.mxu1 %v3856_v35 }
 0x417   : > { %v1725_v25 = vpack.c.bf16 %v1697_v42, %v1696_v22 }
 0x41c   : > { %3311 = vmatmul.mubr.msk.bf16.vlgmr.msra.gmra.mxu1 %vm1369_vm3, %v1725_v25 }
 0x41d   : > { %3321 = vmatpush3.bf16.msra.mxu1 %v4414_v1  ;;  %3322 = vmatprep.mubr.msk.bf16.mxu1 %vm3858_vm1, %v3856_v35 }
 0x41e   : > { %3332 = vmatprep.subr.bf16.mxu1 %v3856_v35 }
 0x426   : > { %v1594_v26 = vpop.xlane.xlu1 %1593 }
 0x427   : > { %3592 = vrcp.f32 %v1594_v26 }
 0x42a   : > { %v1588_v41 = vpop.xlane.xlu1 %1587 }
 0x42b   : > { %v1597_v38 = vpop.xlane.xlu0 %1596 }
 0x42c   : > { %3594 = vrcp.f32 %v1597_v38 }
 0x42d   : > { %3596 = vrcp.f32 %v1588_v41 }
 0x42e   : > { %v1606_v45 = vpop.xlane.xlu1 %1605 }
 0x42f   : > { %v1591_v58 = vpop.xlane.xlu0 %1590 }
 0x430   : > { %3598 = vrcp.f32 %v1591_v58 }
 0x431   : > { %3600 = vrcp.f32 %v1606_v45 }
 0x432   : > { %v1600_v62 = vpop.xlane.xlu1 %1599 }
 0x433   : > { %v1609_v18 = vpop.xlane.xlu0 %1608 }
 0x434   : > { %3602 = vrcp.f32 %v1609_v18  ;;  %v3593_v40 = vpop.eup %3592 }
 0x435   : > { %3604 = vrcp.f32 %v1600_v62  ;;  %v1700_v46 = vmul.f32 %v3593_v40, %v4543_v51 }
 0x436   : > { %v1618_v1 = vpop.xlane.xlu1 %1617 }
 0x437   : > { %v1603_v15 = vpop.xlane.xlu0 %1602 }
 0x438   : > { %3606 = vrcp.f32 %v1603_v15 }
 0x439   : > { %v3595_v49 = vpop.eup %3594  ;;  %3608 = vrcp.f32 %v1618_v1 }
 0x43a   : > { %v1612_v33 = vpop.xlane.xlu1 %1611  ;;  %v1701_v56 = vmul.f32 %v3595_v49, %v4551_v9  ;;  %v3597_v47 = vpop.eup %3596 }
 0x43b   : > { %v1621_v23 = vpop.xlane.xlu0 %1620  ;;  %v1698_v5 = vmul.f32 %v3597_v47, %v4549_v28 }
 0x43c   : > { %3610 = vrcp.f32 %v1621_v23  ;;  %v1727_v59 = vpack.c.bf16 %v1701_v56, %v1700_v46 }
 0x43d   : > { %v3599_v54 = vpop.eup %3598  ;;  %3612 = vrcp.f32 %v1612_v33 }
 0x43e   : > { %3323 = vmatmul.mubr.msk.bf16.vlgmr.msra.gmra.mxu1 %vm1369_vm3, %v1727_v59  ;;  %v1630_v30 = vpop.xlane.xlu1 %1629  ;;  %v1699_v13 = vmul.f32 %v3599_v54, %v4561_v19  ;;  %v3601_v17 = vpop.eup %3600 }
 0x43f   : > { %3333 = vmatpush3.bf16.msra.mxu1 %v4433_v29  ;;  %v1615_v50 = vpop.xlane.xlu0 %1614  ;;  %3334 = vmatprep.mubr.msk.bf16.mxu1 %vm3858_vm1, %v3856_v35  ;;  %v1704_v28 = vmul.f32 %v3601_v17, %v4559_v60 }
 0x440   : > { %3614 = vrcp.f32 %v1615_v50  ;;  %v1726_v51 = vpack.c.bf16 %v1699_v13, %v1698_v5  ;;  %3344 = vmatprep.subr.bf16.mxu1 %v3856_v35 }
 0x441   : > { %v3603_v9 = vpop.eup %3602  ;;  %3616 = vrcp.f32 %v1630_v30 }
 0x442   : > { %3317 = vmatmul.mubr.msk.bf16.vlgmr.msra.gmra.mxu0 %vm1369_vm3, %v1726_v51  ;;  %v1624_v44 = vpop.xlane.xlu1 %1623  ;;  %v1705_v19 = vmul.f32 %v3603_v9, %v4571_v16  ;;  %v3605_v43 = vpop.eup %3604 }
 0x443   : > { %3327 = vmatpush3.bf16.msra.mxu0 %v4443_v11  ;;  %v1633_v29 = vpop.xlane.xlu0 %1632  ;;  %3328 = vmatprep.mubr.msk.bf16.mxu0 %vm3858_vm1, %v3856_v35  ;;  %v1702_v60 = vmul.f32 %v3605_v43, %v4569_v10 }
 0x444   : > { %3618 = vrcp.f32 %v1633_v29  ;;  %v1729_v55 = vpack.c.bf16 %v1705_v19, %v1704_v28  ;;  %3338 = vmatprep.subr.bf16.mxu0 %v3856_v35 }
 0x445   : > { %v3607_v6 = vpop.eup %3606  ;;  %3620 = vrcp.f32 %v1624_v44 }
 0x446   : > { %3335 = vmatmul.mubr.msk.bf16.vlgmr.msra.gmra.mxu1 %vm1369_vm3, %v1729_v55  ;;  %v1642_v61 = vpop.xlane.xlu1 %1641  ;;  %v1703_v16 = vmul.f32 %v3607_v6, %v4581_v36  ;;  %v3609_v22 = vpop.eup %3608 }
 0x447   : > { %3345 = vmatpush3.bf16.msra.mxu1 %v4452_v21  ;;  %v1627_v11 = vpop.xlane.xlu0 %1626  ;;  %3346 = vmatprep.mubr.msk.bf16.mxu1 %vm3858_vm1, %v3856_v35  ;;  %v1708_v10 = vmul.f32 %v3609_v22, %v4579_v4 }
 0x448   : > { %3622 = vrcp.f32 %v1627_v11  ;;  %v1728_v42 = vpack.c.bf16 %v1703_v16, %v1702_v60  ;;  %3356 = vmatprep.subr.bf16.mxu1 %v3856_v35 }
 0x449   : > { %v3611_v25 = vpop.eup %3610  ;;  %3624 = vrcp.f32 %v1642_v61 }
 0x44a   : > { %3329 = vmatmul.mubr.msk.bf16.vlgmr.msra.gmra.mxu0 %vm1369_vm3, %v1728_v42  ;;  %v1636_v26 = vpop.xlane.xlu1 %1635  ;;  %v1709_v36 = vmul.f32 %v3611_v25, %v4591_v32  ;;  %v3613_v41 = vpop.eup %3612 }
 0x44b   : > { %3339 = vmatpush3.bf16.msra.mxu0 %v4464_v12  ;;  %v1645_v21 = vpop.xlane.xlu0 %1644  ;;  %3340 = vmatprep.mubr.msk.bf16.mxu0 %vm3858_vm1, %v3856_v35  ;;  %v1706_v4 = vmul.f32 %v3613_v41, %v4589_v3 }
 0x44c   : > { %3626 = vrcp.f32 %v1645_v21  ;;  %v1731_v38 = vpack.c.bf16 %v1709_v36, %v1708_v10  ;;  %3350 = vmatprep.subr.bf16.mxu0 %v3856_v35 }
 0x44d   : > { %v3615_v45 = vpop.eup %3614  ;;  %3628 = vrcp.f32 %v1636_v26 }
 0x44e   : > { %3347 = vmatmul.mubr.msk.bf16.vlgmr.msra.gmra.mxu1 %vm1369_vm3, %v1731_v38  ;;  %v1654_v58 = vpop.xlane.xlu1 %1653  ;;  %v1707_v32 = vmul.f32 %v3615_v45, %v4601_v2  ;;  %v3617_v62 = vpop.eup %3616 }
 0x44f   : > { %3357 = vmatpush3.bf16.msra.mxu1 %v4405_v48  ;;  %v1639_v12 = vpop.xlane.xlu0 %1638  ;;  %3358 = vmatprep.mubr.msk.bf16.mxu1 %vm3858_vm1, %v3856_v35  ;;  %v1712_v40 = vmul.f32 %v3617_v62, %v4599_v34 }
 0x450   : > { %3630 = vrcp.f32 %v1639_v12  ;;  %v1730_v18 = vpack.c.bf16 %v1707_v32, %v1706_v4  ;;  %3368 = vmatprep.subr.bf16.mxu1 %v3856_v35 }
 0x451   : > { %v3619_v1 = vpop.eup %3618  ;;  %3632 = vrcp.f32 %v1654_v58 }
 0x452   : > { %3341 = vmatmul.mubr.msk.bf16.vlgmr.msra.gmra.mxu0 %vm1369_vm3, %v1730_v18  ;;  %v1713_v3 = vmul.f32 %v3619_v1, %v4611_v8  ;;  %v3621_v2 = vpop.eup %3620  ;;  %v1648_v48 = vpop.xlane.xlu1 %1647 }
 0x453   : > { %3351 = vmatpush3.bf16.msra.mxu0 %v4480_v20  ;;  %v1657_v15 = vpop.xlane.xlu0 %1656  ;;  %3352 = vmatprep.mubr.msk.bf16.mxu0 %vm3858_vm1, %v3856_v35  ;;  %v1710_v34 = vmul.f32 %v3621_v2, %v4609_v31 }
 0x454   : > { %3634 = vrcp.f32 %v1657_v15  ;;  %v1733_v49 = vpack.c.bf16 %v1713_v3, %v1712_v40  ;;  %3362 = vmatprep.subr.bf16.mxu0 %v3856_v35 }
 0x455   : > { %v3623_v33 = vpop.eup %3622  ;;  %3636 = vrcp.f32 %v1648_v48 }
 0x456   : > { %3359 = vmatmul.mubr.msk.bf16.vlgmr.msra.gmra.mxu1 %vm1369_vm3, %v1733_v49  ;;  %v1711_v8 = vmul.f32 %v3623_v33, %v4620_v52  ;;  %v3625_v46 = vpop.eup %3624  ;;  %v2444_v54 = vpop.permute.xlu1 %2443 }
 0x457   : > { %3369 = vmatpush3.bf16.msra.mxu1 %v4660_v14  ;;  %v1651_v20 = vpop.xlane.xlu0 %1650  ;;  %3370 = vmatprep.mubr.msk.bf16.mxu1 %vm3858_vm1, %v3856_v35  ;;  %v1716_v23 = vmul.f32 %v3625_v46, %v4618_v53 }
 0x458   : > { %3638 = vrcp.f32 %v1651_v20  ;;  %v1732_v56 = vpack.c.bf16 %v1711_v8, %v1710_v34  ;;  %3380 = vmatprep.subr.bf16.mxu1 %v3856_v35 }
 0x459   : > { %v3627_v47 = vpop.eup %3626 }
 0x45a   : > { %3353 = vmatmul.mubr.msk.bf16.vlgmr.msra.gmra.mxu0 %vm1369_vm3, %v1732_v56  ;;  %v1717_v31 = vmul.f32 %v3627_v47, %v4628_v7  ;;  %v3629_v59 = vpop.eup %3628 }
 0x45b   : > { %3363 = vmatpush3.bf16.msra.mxu0 %v4658_v63  ;;  %3364 = vmatprep.mubr.msk.bf16.mxu0 %vm3858_vm1, %v3856_v35  ;;  %v1714_v30 = vmul.f32 %v3629_v59, %v4626_v37  ;;  %v2397_v13 = vpop.permute.xlu0 %2396 }
 0x45c   : > { %v1735_v52 = vpack.c.bf16 %v1717_v31, %v1716_v23  ;;  %3374 = vmatprep.subr.bf16.mxu0 %v3856_v35 }
 0x45d   : > { %v3631_v14 = vpop.eup %3630 }
 0x45e   : > { %3371 = vmatmul.mubr.msk.bf16.vlgmr.msra.gmra.mxu1 %vm1369_vm3, %v1735_v52  ;;  %v1715_v5 = vmul.f32 %v3631_v14, %v4636_v24  ;;  %v3633_v53 = vpop.eup %3632 }
 0x45f   : > { %3381 = vmatpush3.bf16.msra.mxu1 %v2444_v54  ;;  %3382 = vmatprep.mubr.msk.bf16.mxu1 %vm3858_vm1, %v3856_v35  ;;  %v1720_v17 = vmul.f32 %v3633_v53, %v4634_v0 }
 0x460   : > { %v1734_v7 = vpack.c.bf16 %v1715_v5, %v1714_v30 }
 0x461   : > { %v3635_v63 = vpop.eup %3634 }
 0x462   : > { %3365 = vmatmul.mubr.msk.bf16.vlgmr.msra.gmra.mxu0 %vm1369_vm3, %v1734_v7  ;;  %v1721_v50 = vmul.f32 %v3635_v63, %v4644_v57  ;;  %v3637_v51 = vpop.eup %3636 }
 0x463   : > { %3375 = vmatpush3.bf16.msra.mxu0 %v2397_v13  ;;  %3376 = vmatprep.mubr.msk.bf16.mxu0 %vm3858_vm1, %v3856_v35  ;;  %v1718_v9 = vmul.f32 %v3637_v51, %v4642_v27 }
 0x464   : > { %v1737_v37 = vpack.c.bf16 %v1721_v50, %v1720_v17 }
 0x465   : > { %v3639_v24 = vpop.eup %3638 }
 0x466   : > { %3383 = vmatmul.mubr.msk.bf16.vlgmr.msra.gmra.mxu1 %vm1369_vm3, %v1737_v37  ;;  %v1719_v44 = vmul.f32 %v3639_v24, %v4650_v39 }
 0x468   : > { %v1736_v28 = vpack.c.bf16 %v1719_v44, %v1718_v9 }
 0x46a   : > { %3377 = vmatmul.mubr.msk.bf16.vlgmr.msra.gmra.mxu0 %vm1369_vm3, %v1736_v28 }
 0x4c1   : > { %v1778_v19 = vpop.f32.mrf.mxu0 }
 0x4c2   : > { %v3072_v0 = vpack.c.bf16 %v1778_v19, %v1778_v19 }
 0x4c3   : > { %v3294_v57 = vpop.f32.mrf.mxu0 }
 0x4c4   : > { %2535 = vst.msk [vmem:[#allocation2] sm:$0xf] %vm2534_vm4, %v3072_v0 }
 0x4c5   : > { %v1781_v43 = vpop.f32.mrf.mxu0 }
 0x4c6   : > { %v3073_v29 = vpack.c.bf16 %v1781_v43, %v1781_v43  ;;  %v3506_v43 = vld [vmem:[#allocation8 + $0x8] sm:$0xff]  }
 0x4c7   : > { %v3295_v35 = vpop.f32.mrf.mxu0  ;;  %3386 = vmatprep.subr.bf16.mxu0 %v3506_v43 }
 0x4c8   : > { %2536 = vst.msk [vmem:[#allocation2 + $0x4] sm:$0xf] %vm2534_vm4, %v3073_v29  ;;  %3387 = vmatpush3.bf16.msra.mxu0 %v3506_v43 }
 0x4c9   : > { %v1872_v55 = vpop.f32.mrf.mxu0 }
 0x4ca   : > { %v3076_v6 = vpack.c.bf16 %v1872_v55, %v1872_v55 }
 0x4cb   : > { %v3306_v61 = vpop.f32.mrf.mxu0 }
 0x4cc   : > { %2539 = vst.msk [vmem:[#allocation2 + $0x10] sm:$0xf] %vm2534_vm4, %v3076_v6 }
 0x4cd   : > { %v1875_v27 = vpop.f32.mrf.mxu0 }
 0x4ce   : > { %v3077_v39 = vpack.c.bf16 %v1875_v27, %v1875_v27 }
 0x4cf   : > { %v3307_v60 = vpop.f32.mrf.mxu0 }
 0x4d0   : > { %2540 = vst.msk [vmem:[#allocation2 + $0x14] sm:$0xf] %vm2534_vm4, %v3077_v39  ;;  %v3507_v39 = vld [vmem:[#allocation8] sm:$0xff]  }
 0x4d1   : > { %3388 = vmatprep.subr.bf16.mxu0 %v3507_v39 }
 0x4d2   : > { %3389 = vmatpush3.bf16.msra.mxu0 %v3507_v39 }
 0x4d4   : > { %v1825_v16 = vpop.f32.mrf.mxu1 }
 0x4d5   : > { %v3074_v22 = vpack.c.bf16 %v1825_v16, %v1825_v16 }
 0x4d6   : > { %v3300_v11 = vpop.f32.mrf.mxu1 }
 0x4d7   : > { %2537 = vst.msk [vmem:[#allocation2 + $0x8] sm:$0xf] %vm2534_vm4, %v3074_v22 }
 0x4d8   : > { %v1828_v42 = vpop.f32.mrf.mxu1 }
 0x4d9   : > { %v3075_v25 = vpack.c.bf16 %v1828_v42, %v1828_v42 }
 0x4da   : > { %v3301_v26 = vpop.f32.mrf.mxu1 }
 0x4db   : > { %2538 = vst.msk [vmem:[#allocation2 + $0xc] sm:$0xf] %vm2534_vm4, %v3075_v25 }
 0x4dc   : > { %v1919_v10 = vpop.f32.mrf.mxu1 }
 0x4dd   : > { %v3078_v36 = vpack.c.bf16 %v1919_v10, %v1919_v10 }
 0x4de   : > { %v3312_v41 = vpop.f32.mrf.mxu1 }
 0x4df   : > { %2541 = vst.msk [vmem:[#allocation2 + $0x18] sm:$0xf] %vm2534_vm4, %v3078_v36 }
 0x4e0   : > { %v1922_v21 = vpop.f32.mrf.mxu1 }
 0x4e1   : > { %v3079_v38 = vpack.c.bf16 %v1922_v21, %v1922_v21 }
 0x4e2   : > { %v3313_v45 = vpop.f32.mrf.mxu1 }
 0x4e3   : > { %2542 = vst.msk [vmem:[#allocation2 + $0x1c] sm:$0xf] %vm2534_vm4, %v3079_v38 }
 0x4fe   : > { %v2013_v58 = vpop.f32.mrf.mxu1 }
 0x4ff   : > { %v3082_v4 = vpack.c.bf16 %v2013_v58, %v2013_v58 }
 0x500   : > { %v3324_v32 = vpop.f32.mrf.mxu1 }
 0x501   : > { %2567 = vrot.lane.b32.xlu0 %v3082_v4, %s3862_s13 }
 0x502   : > { %v1966_v62 = vpop.f32.mrf.mxu0  ;;  %v2016_v12 = vpop.f32.mrf.mxu1 }
 0x503   : > { %v3080_v18 = vpack.c.bf16 %v1966_v62, %v1966_v62  ;;  %v3083_v1 = vpack.c.bf16 %v2016_v12, %v2016_v12 }
 0x504   : > { %v3318_v40 = vpop.f32.mrf.mxu0  ;;  %v3325_v3 = vpop.f32.mrf.mxu1 }
 0x505   : > { %2569 = vrot.lane.b32.xlu1 %v3083_v1, %s3862_s13  ;;  %2563 = vrot.lane.b32.xlu0 %v3080_v18, %s3862_s13 }
 0x506   : > { %v1969_v2 = vpop.f32.mrf.mxu0  ;;  %v2107_v48 = vpop.f32.mrf.mxu1 }
 0x507   : > { %v3081_v15 = vpack.c.bf16 %v1969_v2, %v1969_v2  ;;  %v3086_v49 = vpack.c.bf16 %v2107_v48, %v2107_v48 }
 0x508   : > { %v3319_v33 = vpop.f32.mrf.mxu0  ;;  %v3336_v34 = vpop.f32.mrf.mxu1 }
 0x509   : > { %2565 = vrot.lane.b32.xlu1 %v3081_v15, %s3862_s13  ;;  %2575 = vrot.lane.b32.xlu0 %v3086_v49, %s3862_s13 }
 0x50a   : > { %v2060_v8 = vpop.f32.mrf.mxu0  ;;  %v2110_v46 = vpop.f32.mrf.mxu1 }
 0x50b   : > { %v3084_v20 = vpack.c.bf16 %v2060_v8, %v2060_v8  ;;  %v3087_v56 = vpack.c.bf16 %v2110_v46, %v2110_v46 }
 0x50c   : > { %v3330_v47 = vpop.f32.mrf.mxu0  ;;  %v3337_v23 = vpop.f32.mrf.mxu1 }
 0x50d   : > { %2577 = vrot.lane.b32.xlu1 %v3087_v56, %s3862_s13  ;;  %2571 = vrot.lane.b32.xlu0 %v3084_v20, %s3862_s13 }
 0x50e   : > { %v2063_v31 = vpop.f32.mrf.mxu0  ;;  %v2201_v59 = vpop.f32.mrf.mxu1 }
 0x50f   : > { %v3085_v52 = vpack.c.bf16 %v2063_v31, %v2063_v31  ;;  %v3090_v14 = vpack.c.bf16 %v2201_v59, %v2201_v59 }
 0x510   : > { %v3331_v54 = vpop.f32.mrf.mxu0  ;;  %v3348_v30 = vpop.f32.mrf.mxu1 }
 0x511   : > { %2573 = vrot.lane.b32.xlu1 %v3085_v52, %s3862_s13  ;;  %2620 = vrot.lane.b32.xlu0 %v3090_v14, %s3863_s15 }
 0x512   : > { %v2154_v5 = vpop.f32.mrf.mxu0  ;;  %v2204_v53 = vpop.f32.mrf.mxu1 }
 0x513   : > { %v3088_v7 = vpack.c.bf16 %v2154_v5, %v2154_v5  ;;  %v3091_v63 = vpack.c.bf16 %v2204_v53, %v2204_v53 }
 0x514   : > { %v3342_v13 = vpop.f32.mrf.mxu0  ;;  %v3349_v17 = vpop.f32.mrf.mxu1 }
 0x515   : > { %2622 = vrot.lane.b32.xlu1 %v3091_v63, %s3863_s15  ;;  %2616 = vrot.lane.b32.xlu0 %v3088_v7, %s3863_s15 }
 0x516   : > { %v2157_v50 = vpop.f32.mrf.mxu0  ;;  %v2295_v51 = vpop.f32.mrf.mxu1 }
 0x517   : > { %v3089_v37 = vpack.c.bf16 %v2157_v50, %v2157_v50  ;;  %v3094_v36 = vpack.c.bf16 %v2295_v51, %v2295_v51 }
 0x518   : > { %v3343_v24 = vpop.f32.mrf.mxu0  ;;  %v3360_v9 = vpop.f32.mrf.mxu1 }
 0x519   : > { %2618 = vrot.lane.b32.xlu1 %v3089_v37, %s3863_s15 }
 0x51a   : > { %v2248_v44 = vpop.f32.mrf.mxu0  ;;  %v2298_v28 = vpop.f32.mrf.mxu1 }
 0x51b   : > { %v3092_v19 = vpack.c.bf16 %v2248_v44, %v2248_v44  ;;  %v3095_v4 = vpack.c.bf16 %v2298_v28, %v2298_v28  ;;  %v3053_v44 = vld [vmem:[%s4889_s4] ss:$0 sm:$0xff] }
 0x51c   : > { %v3354_v0 = vpop.f32.mrf.mxu0  ;;  %v3361_v57 = vpop.f32.mrf.mxu1 }
 0x51d   : > { %2624 = vrot.lane.b32.xlu0 %v3092_v19, %s3863_s15 }
 0x51e   : > { %v2251_v29 = vpop.f32.mrf.mxu0  ;;  %v2389_v35 = vpop.f32.mrf.mxu1 }
 0x51f   : > { %v3093_v55 = vpack.c.bf16 %v2251_v29, %v2251_v29  ;;  %v3098_v6 = vpack.c.bf16 %v2389_v35, %v2389_v35 }
 0x520   : > { %v3355_v61 = vpop.f32.mrf.mxu0  ;;  %v3372_v27 = vpop.f32.mrf.mxu1 }
 0x521   : > { %2626 = vrot.lane.b32.xlu1 %v3093_v55, %s3863_s15  ;;  %2673 = vrot.lane.b32.xlu0 %v3098_v6, %s3864_s21 }
 0x522   : > { %v2342_v60 = vpop.f32.mrf.mxu0  ;;  %v2392_v16 = vpop.f32.mrf.mxu1 }
 0x523   : > { %v3096_v22 = vpack.c.bf16 %v2342_v60, %v2342_v60  ;;  %v3099_v11 = vpack.c.bf16 %v2392_v16, %v2392_v16 }
 0x524   : > { %v3366_v42 = vpop.f32.mrf.mxu0  ;;  %v3373_v25 = vpop.f32.mrf.mxu1 }
 0x525   : > { %2675 = vrot.lane.b32.xlu1 %v3099_v11, %s3864_s21  ;;  %2669 = vrot.lane.b32.xlu0 %v3096_v22, %s3864_s21 }
 0x526   : > { %v2345_v26 = vpop.f32.mrf.mxu0  ;;  %v2483_v10 = vpop.f32.mrf.mxu1 }
 0x527   : > { %v3097_v41 = vpack.c.bf16 %v2345_v26, %v2345_v26  ;;  %v3102_v1 = vpack.c.bf16 %v2483_v10, %v2483_v10 }
 0x528   : > { %v3367_v21 = vpop.f32.mrf.mxu0  ;;  %v3384_v38 = vpop.f32.mrf.mxu1 }
 0x529   : > { %2628 = vrot.lane.b32.xlu0 %v3094_v36, %s3863_s15  ;;  %2671 = vrot.lane.b32.xlu1 %v3097_v41, %s3864_s21 }
 0x52a   : > { %v2436_v45 = vpop.f32.mrf.mxu0  ;;  %v2486_v58 = vpop.f32.mrf.mxu1 }
 0x52b   : > { %v3100_v32 = vpack.c.bf16 %v2436_v45, %v2436_v45  ;;  %v3103_v2 = vpack.c.bf16 %v2486_v58, %v2486_v58 }
 0x52c   : > { %v3378_v62 = vpop.f32.mrf.mxu0  ;;  %v3385_v12 = vpop.f32.mrf.mxu1 }
 0x52d   : > { %2630 = vrot.lane.b32.xlu1 %v3095_v4, %s3863_s15  ;;  %2677 = vrot.lane.b32.xlu0 %v3100_v32, %s3864_s21  ;;  %s3778_s15 = scalar_lea.vmem %s3777_s23, 2048 }
 0x52e   : > { %v2439_v18 = vpop.f32.mrf.mxu0  ;;  %p3780_p0 = scmp.lt.s32.totalorder %s3778_s15, %s3772_s17 }
 0x52f   : > { %v3101_v40 = vpack.c.bf16 %v2439_v18, %v2439_v18 }
 0x530   : > { %v3379_v3 = vpop.f32.mrf.mxu0  ;;  %p3781_p10 = por %p3780_p0, %p3779_p9 }
 0x531   : > { %2681 = vrot.lane.b32.xlu0 %v3102_v1, %s3864_s21  ;;  %2679 = vrot.lane.b32.xlu1 %v3101_v40, %s3864_s21 }
 0x532   : > { %p3782_p3 = pnand %p3781_p10, %p3775_p7 }
 0x535   : > { %2683 = vrot.lane.b32.xlu1 %v3103_v2, %s3864_s21 }
 0x573   : > { %v2568_v48 = vpop.permute.xlu0 %2567 }
 0x574   : > { %2590 = vst.msk [vmem:[#allocation2 + $0x8] sm:$0xf] %vm2587_vm5, %v2568_v48 }
 0x577   : > { %v2570_v15 = vpop.permute.xlu1 %2569  ;;  %v2564_v49 = vpop.permute.xlu0 %2563 }
 0x578   : > { %2591 = vst.msk [vmem:[#allocation2 + $0xc] sm:$0xf] %vm2587_vm5, %v2570_v15  ;;  %2588 = vst.msk [vmem:[#allocation2] sm:$0xf] %vm2587_vm5, %v2564_v49 }
 0x57b   : > { %v2566_v33 = vpop.permute.xlu1 %2565  ;;  %v2576_v34 = vpop.permute.xlu0 %2575 }
 0x57c   : > { %2589 = vst.msk [vmem:[#allocation2 + $0x4] sm:$0xf] %vm2587_vm5, %v2566_v33  ;;  %2594 = vst.msk [vmem:[#allocation2 + $0x18] sm:$0xf] %vm2587_vm5, %v2576_v34 }
 0x57f   : > { %v2578_v8 = vpop.permute.xlu1 %2577  ;;  %v2572_v46 = vpop.permute.xlu0 %2571 }
 0x580   : > { %2595 = vst.msk [vmem:[#allocation2 + $0x1c] sm:$0xf] %vm2587_vm5, %v2578_v8  ;;  %2592 = vst.msk [vmem:[#allocation2 + $0x10] sm:$0xf] %vm2587_vm5, %v2572_v46 }
 0x583   : > { %v2574_v20 = vpop.permute.xlu1 %2573  ;;  %v2621_v56 = vpop.permute.xlu0 %2620 }
 0x584   : > { %2593 = vst.msk [vmem:[#allocation2 + $0x14] sm:$0xf] %vm2587_vm5, %v2574_v20 }
 0x585   : > { %2643 = vst.msk [vmem:[#allocation2 + $0x8] sm:$0xf] %vm2640_vm6, %v2621_v56 }
 0x587   : > { %v2623_v47 = vpop.permute.xlu1 %2622  ;;  %v2617_v23 = vpop.permute.xlu0 %2616 }
 0x588   : > { %2644 = vst.msk [vmem:[#allocation2 + $0xc] sm:$0xf] %vm2640_vm6, %v2623_v47  ;;  %2641 = vst.msk [vmem:[#allocation2] sm:$0xf] %vm2640_vm6, %v2617_v23 }
 0x58b   : > { %v2619_v31 = vpop.permute.xlu1 %2618 }
 0x58c   : > { %2642 = vst.msk [vmem:[#allocation2 + $0x4] sm:$0xf] %vm2640_vm6, %v2619_v31 }
 0x58f   : > { %v2625_v59 = vpop.permute.xlu0 %2624 }
 0x590   : > { %2645 = vst.msk [vmem:[#allocation2 + $0x10] sm:$0xf] %vm2640_vm6, %v2625_v59 }
 0x593   : > { %v2627_v52 = vpop.permute.xlu1 %2626  ;;  %v2674_v14 = vpop.permute.xlu0 %2673 }
 0x594   : > { %2646 = vst.msk [vmem:[#allocation2 + $0x14] sm:$0xf] %vm2640_vm6, %v2627_v52 }
 0x595   : > { %2696 = vst.msk [vmem:[#allocation2 + $0x8] sm:$0xf] %vm2693_vm7, %v2674_v14 }
 0x597   : > { %v2676_v54 = vpop.permute.xlu1 %2675  ;;  %v2670_v30 = vpop.permute.xlu0 %2669 }
 0x598   : > { %2697 = vst.msk [vmem:[#allocation2 + $0xc] sm:$0xf] %vm2693_vm7, %v2676_v54  ;;  %2694 = vst.msk [vmem:[#allocation2] sm:$0xf] %vm2693_vm7, %v2670_v30 }
 0x59b   : > { %v2672_v5 = vpop.permute.xlu1 %2671  ;;  %v2629_v53 = vpop.permute.xlu0 %2628 }
 0x59c   : > { %2695 = vst.msk [vmem:[#allocation2 + $0x4] sm:$0xf] %vm2693_vm7, %v2672_v5 }
 0x59d   : > { %2647 = vst.msk [vmem:[#allocation2 + $0x18] sm:$0xf] %vm2640_vm6, %v2629_v53 }
 0x59f   : > { %v2631_v7 = vpop.permute.xlu1 %2630  ;;  %v2678_v63 = vpop.permute.xlu0 %2677  ;;  %v3509_v51 = vld [vmem:[#allocation2 + $0x8] sm:$0xff]  }
 0x5a0   : > { %2648 = vst.msk [vmem:[#allocation2 + $0x1c] sm:$0xf] %vm2640_vm6, %v2631_v7 }
 0x5a1   : > { %2698 = vst.msk [vmem:[#allocation2 + $0x10] sm:$0xf] %vm2693_vm7, %v2678_v63 }
 0x5a3   : > { %v2680_v13 = vpop.permute.xlu1 %2679  ;;  %v2682_v17 = vpop.permute.xlu0 %2681  ;;  %v3508_v50 = vld [vmem:[#allocation2] sm:$0xff]  }
 0x5a4   : > { %2699 = vst.msk [vmem:[#allocation2 + $0x14] sm:$0xf] %vm2693_vm7, %v2680_v13  ;;  %2700 = vst.msk [vmem:[#allocation2 + $0x18] sm:$0xf] %vm2693_vm7, %v2682_v17  ;;  %3390 = vmatprep.mubr.msk.bf16.mxu0 %vm394_vm0, %v3508_v50 }
 0x5a5   : > { %3391 = vmatmul.mubr.msk.bf16.vlgmr.msra.gmra.mxu0 %vm394_vm0, %v3509_v51 }
 0x5a7   : > { %v2684_v37 = vpop.permute.xlu1 %2683 }
 0x5a8   : > { %2701 = vst.msk [vmem:[#allocation2 + $0x1c] sm:$0xf] %vm2693_vm7, %v2684_v37 }
 0x5ab   : > { %v3510_v24 = vld [vmem:[#allocation2 + $0x10] sm:$0xff]  }
 0x5ac   : > { %3394 = vmatprep.mubr.msk.bf16.mxu0 %vm394_vm0, %v3510_v24 }
 0x5af   : > { %v3511_v9 = vld [vmem:[#allocation2 + $0x18] sm:$0xff]  }
 0x5b0   : > { %3395 = vmatmul.mubr.msk.bf16.gmra.mxu0 %vm394_vm0, %v3511_v9 }
 0x665   : > { %v3392_v28 = vpop.f32.mrf.mxu0 }
 0x666   : > { %v2808_v19 = vadd.f32 %v3392_v28, %v3053_v44 }
 0x667   : > { %v2799_v0 = vpop.f32.mrf.mxu0 }
 0x668   : > { %2832 = vst.msk [vmem:[%s355_s12 + $0x10] sm:$0xff] %vm394_vm0, %v2808_v19  ;;  %v2800_v57 = vadd.f32 %v3053_v44, %v2799_v0 }
 0x669   : > { %v3393_v43 = vpop.f32.mrf.mxu0 }
 0x66a   : > { %2830 = vst.msk [vmem:[%s355_s12] sm:$0xff] %vm394_vm0, %v2800_v57  ;;  %v2811_v29 = vadd.f32 %v3393_v43, %v3053_v44 }
 0x66b   : > { %v2802_v35 = vpop.f32.mrf.mxu0 }
 0x66c   : > { %2833 = vst.msk [vmem:[%s355_s12 + $0x18] sm:$0xff] %vm394_vm0, %v2811_v29  ;;  %v2803_v55 = vadd.f32 %v3053_v44, %v2802_v35 }
 0x66e   : > { %2831 = vst.msk [vmem:[%s355_s12 + $0x8] sm:$0xff] %vm394_vm0, %v2803_v55 }
 0x670   : > { %v3396_v6 = vpop.f32.mrf.mxu0 }
 0x671   : > { %v2824_v61 = vadd.f32 %v3396_v6, %v3053_v44 }
 0x672   : > { %v2815_v27 = vpop.f32.mrf.mxu0 }
 0x673   : > { %2836 = vst.msk [vmem:[%s355_s12 + $0x30] sm:$0xff] %vm394_vm0, %v2824_v61  ;;  %v2816_v39 = vadd.f32 %v3053_v44, %v2815_v27 }
 0x674   : > { %v3397_v60 = vpop.f32.mrf.mxu0 }
 0x675   : > { %2834 = vst.msk [vmem:[%s355_s12 + $0x20] sm:$0xff] %vm394_vm0, %v2816_v39  ;;  %v2827_v16 = vadd.f32 %v3397_v60, %v3053_v44 }
 0x676   : > { %v2818_v22 = vpop.f32.mrf.mxu0 }
 0x677   : > { %2837 = vst.msk [vmem:[%s355_s12 + $0x38] sm:$0xff] %vm394_vm0, %v2827_v16  ;;  %v2819_v11 = vadd.f32 %v3053_v44, %v2818_v22 }
 0x679   : > { %2835 = vst.msk [vmem:[%s355_s12 + $0x28] sm:$0xff] %vm394_vm0, %v2819_v11 }
 0x67a   : > { %3785 = shalt.err (!%p3782_p3)
}
 0x67b   : > { %s3786_s21 = scalar_lea.hbm %s4837_s29, 1024  ;;  %s3790_s12 = scalar_lea.hbm %s4892_s7, 2048 }
 0x67c   : > { %p3787_p6 = scmp.ne.s32.totalorder %s4837_s29, %s3786_s21  ;;  %p3791_p13 = scmp.lt.s32.totalorder %s4837_s29, %s4892_s7 }
 0x67d   : > { %p3792_p11 = scmp.lt.s32.totalorder %s3790_s12, %s3786_s21 }
 0x67e   : > { %p3788_p4 = pnand %p3787_p6, %p4916_p2 }
 0x67f   : > { %p3793_p5 = por %p3792_p11, %p3791_p13 }
 0x680   : > { %p3789_p8 = pneg %p3788_p4 }
 0x682   : > { %p3794_p1 = pnand %p3793_p5, %p3789_p8 }
 0x684   : > { %3797 = shalt.err (!%p3794_p1)
}
 0x685   : > { %s3866_s20 = smov 128  }
 0x686   : > { %3420 = dma.vmem_to_hbm [thread:$0]  (%p4916_p2), %s4840_s30, 1024, %s4837_s29, %s2839_s28, %s3866_s20, %s3866_s20, %s3862_s13  }
 0x687 PF: > { %s2868_s17 = sand.u32 1, %s3832_s24   ;;  %p4917_p12 = scmp.ne.s32.totalorder %s4901_s8, 0 }
 0x688   : > { %p4918_p7 = scmp.ge.s32.totalorder %s3844_s27, 2  ;;  %s2869_s19 = scalar_lea.sflag [#allocation5], %s2868_s17 }
 0x68a   : > { %p3440_p9 = pnand %p4918_p7, %p4917_p12 }
 0x68c   : > { %p3441_p0 = pneg %p3440_p9 }
 0x68e   : > { %3827 = dma.done.wait (%p3441_p0), %s2869_s19, 1024  }
 0x68f   : > { %3829 = vsyncadd (%p3441_p0), %s2869_s19, 4294966272  ;;  %p22_p10 = scmp.ge.s32.totalorder %s4007_s16, 4   ;;  %s4919_s24 = smov %s3836_s25 }
 0x690   : > { %s4920_s25 = smov %s3840_s26  ;;  %s4921_s26 = smov %s4016_s10 }
 0x691   : > { %s4922_s27 = smov %s4007_s16  ;;  %24 = sbr.rel (!%p22_p10) target bundleno = 9 (0x9), region = 109 }
 0x696   :  { %2874 = vsyncpa [#allocation4], 1 }
 0x697   :  { %2876 = vsyncpa [#allocation4 + $0x1], 1 }
 0x698   :  { %2877 = vsyncpa [#allocation7], 1 }
 0x699   :  { %2878 = vsyncpa [#allocation10], 1 }
 0x69a   :  { %2879 = vsyncpa [#allocation5], 1 }
 0x69b   :  { %2881 = vsyncpa [#allocation5 + $0x1], 1 }

</bundles_post_ra>
